<compile_context>
chip_gen: v7x
topology: tpu7x:2x2x1
jax: 0.10.0
libtpu: 0.0.40
codegen_flags: <defaults>
</compile_context>

<pallas_src>
import functools
import math

import jax
import jax.numpy as jnp
from jax import lax
from jax.experimental import pallas as pl
from jax.experimental.pallas import tpu as pltpu

# Plain Python float (NOT a jnp scalar) so kernels never close over a traced constant.
NEG_FILL = -9.0e15  # matches torch tensor(-9000000000000000.0)


# -----------------------------------------------------------------------------
# Stage 1: GT front-end -> per-node embeddings g (emitted in the MXU dtype)
# -----------------------------------------------------------------------------
def _gt_node_kernel(
    x_ref, adjm_ref,
    wemb_ref, bemb_ref,
    wq_ref, bq_ref, wk_ref, bk_ref, wv_ref, bv_ref,
    wg1_ref, bg1_ref, wg2_ref, bg2_ref,
    g_ref,
):
    # One grid step == one batch element.
    x = x_ref[0]              # (n, F) f32
    adjm = adjm_ref[...]      # (n, n) bf16 exact 0/1 mask
    mxu = wemb_ref.dtype
    emb = wemb_ref.shape[1]

    # embedding (MXU-dtype operands, f32 accumulation)
    h0 = jnp.dot(x.astype(mxu), wemb_ref[...],
                 preferred_element_type=jnp.float32) + bemb_ref[...]
    h0m = h0.astype(mxu)

    # adjacency-masked self-attention
    q = jnp.dot(h0m, wq_ref[...], preferred_element_type=jnp.float32) + bq_ref[...]
    k = jnp.dot(h0m, wk_ref[...], preferred_element_type=jnp.float32) + bk_ref[...]
    v = jnp.dot(h0m, wv_ref[...], preferred_element_type=jnp.float32) + bv_ref[...]

    # scores = q @ k.T, contracting on E of both operands (no materialized k.T).
    scores = lax.dot_general(q.astype(mxu), k.astype(mxu), (((1,), (1,)), ((), ())),
                             preferred_element_type=jnp.float32)
    scores = scores * (1.0 / math.sqrt(emb))
    scores = jnp.where(adjm > 0, scores, NEG_FILL)
    m = jnp.max(scores, axis=-1, keepdims=True)
    p = jnp.exp(scores - m)
    # EUP approximate reciprocal: softmax normalization off the VALU path.
    atten = p * pl.reciprocal(jnp.sum(p, axis=-1, keepdims=True), approx=True)

    h1 = h0 + jnp.dot(atten.astype(mxu), v.astype(mxu),
                      preferred_element_type=jnp.float32)

    # position-wise FF (residual)
    hg = jnp.maximum(
        jnp.dot(h1.astype(mxu), wg1_ref[...],
                preferred_element_type=jnp.float32) + bg1_ref[...],
        0.0)
    g = h1 + jnp.dot(hg.astype(mxu), wg2_ref[...],
                     preferred_element_type=jnp.float32) + bg2_ref[...]

    g_ref[0] = g.astype(g_ref.dtype)   # (n, E), already in the MXU dtype
    # TODO(synk): for very large n, tile this attention flash-style over query blocks
    # (bounds the (n, n) score block on v7x's 64 MiB VMEM and gives its second
    # TensorCore work when B is small).


# -----------------------------------------------------------------------------
# Stage 2: pairwise concat + FF + adjacency mask, tiled over (b, i-tile, j-tile)
#   out[b, c, i, j] = mask(adj[i, j],
#       w2^T @ relu(w1a^T g[b, i] + w1b^T g[b, j] + b1) + b2)
#   Node-j lives in the lane axis everywhere -> lane-dense (B, C, n, n) stores.
# -----------------------------------------------------------------------------
def _pair_ff_kernel(
    gr_ref,    # (1, TM, E)   row tile of g, mxu dtype
    gc_ref,    # (1, TN, E)   col tile of g, mxu dtype
    adjm_ref,  # (TM, TN)     bf16 exact 0/1 mask
    w1a_ref,   # (E, H)       mxu dtype
    w1bT_ref,  # (H, E)       mxu dtype
    b1_ref,    # (1, H)       f32
    w2T_ref,   # (C, H)       mxu dtype
    b2_ref,    # (C, 1)       f32
    out_ref,   # (1, C, TM, TN) f32
    a_scr,     # (TM, H)      f32 VMEM scratch
    *, r_chunk, hid_dtype,
):
    tm = out_ref.shape[2]
    w2t = w2T_ref[...]
    b2 = b2_ref[...]

    # First FF layer, split over the pairwise concat:
    #   a[i, h]  = g_i . w1a[:, h] + b1[h]   (row half, parked in VMEM scratch)
    #   bT[h, j] = g_j . w1b[:, h]           (col half, resident in vregs)
    a_scr[...] = jnp.dot(gr_ref[0], w1a_ref[...],
                         preferred_element_type=jnp.float32) + b1_ref[...]
    bT = lax.dot_general(w1bT_ref[...], gc_ref[0], (((1,), (1,)), ((), ())),
                         preferred_element_type=jnp.float32).astype(hid_dtype)

    def chunk_body(ci, carry):
        r0 = pl.multiple_of(ci * r_chunk, r_chunk)
        a_chunk = a_scr[pl.ds(r0, r_chunk), :]              # (R, H) f32, sublane slice
        aT = a_chunk.T.astype(hid_dtype)                    # (H, R): one small transpose
        adj_chunk = adjm_ref[pl.ds(r0, r_chunk), :]         # (R, TN)
        rows = []
        for rr in range(r_chunk):                           # static unroll over the chunk
            hid = jnp.maximum(aT[:, rr:rr + 1] + bT, 0)     # (H, TN), hid dtype
            if hid.dtype != w2t.dtype:
                hid = hid.astype(w2t.dtype)                 # only on the v5e f32 path
            o = jnp.dot(w2t, hid, preferred_element_type=jnp.float32) + b2  # (C, TN)
            rows.append(jnp.where(adj_chunk[rr:rr + 1, :] > 0, o, NEG_FILL))
        # One full-sublane, lane-dense (C, R, TN) slab store per chunk.
        out_ref[0, :, pl.ds(r0, r_chunk), :] = jnp.stack(rows, axis=1)
        return carry

    lax.fori_loop(0, tm // r_chunk, chunk_body, 0, unroll=False)
    # TODO(synk): batch the (C,H)x(H,TN) second GEMM across the whole chunk once the
    # (H, R*TN) relayout proves cheaper than the per-row MXU pushes it would save.


# -----------------------------------------------------------------------------
# Wrapper
# -----------------------------------------------------------------------------
def _pick_tiles(n):
    """Stage-2 pair-tile sizes: TN (lane axis) capped at 128, TM (sublane) up to 512."""
    if n % 128 == 0:
        tn = 128
        tm = next((t for t in (512, 256, 128) if n % t == 0), 128)
    else:
        # Awkward n: full-extent blocks are always layout-legal.
        # TODO(synk): pad n up to a multiple of 128 for large non-multiple graphs.
        tn = n
        tm = n
    r = next((r for r in (8, 4, 2, 1) if tm % r == 0), 1)
    return tm, tn, r


def _hid_dtype(mxu_dtype):
    """Dtype of the pairwise add/relu pass: bf16 on bf16-VALU chips, else f32."""
    if jnp.dtype(mxu_dtype) == jnp.dtype(jnp.float32):
        return jnp.float32
    kind = ""
    try:
        kind = (jax.devices()[0].device_kind or "").lower()
    except Exception:
        kind = ""
    # v5 generation has no bf16-native VALU; keep the big elementwise pass in f32 there.
    return jnp.float32 if "v5" in kind else mxu_dtype


@functools.partial(jax.jit, static_argnames=("i", "mxu_dtype"))
def gnngen_forward(x, adj, params, i=None, mxu_dtype=jnp.bfloat16):
    """x: (B, n, feature_num), adj: (n, n). Returns (B, C, n, n) (or (B, n, n) if i)."""
    B, n, F = x.shape
    E = params["wemb"].shape[1]
    ENC = params["wg1"].shape[1]
    H = params["w2"].shape[0]
    C = params["w2"].shape[1]
    mxu = mxu_dtype
    hid_dtype = _hid_dtype(mxu)

    # Exact 0/1 adjacency mask in bf16: identical `> 0` semantics, half the DMA bytes.
    adjm = (adj > 0.0).astype(jnp.bfloat16)

    # ---------------- stage 1: node embeddings g (mxu dtype) ----------------
    def full(shape):
        return pl.BlockSpec(shape, lambda b: tuple(0 for _ in shape))

    gt_in_specs = [
        pl.BlockSpec((1, n, F), lambda b: (b, 0, 0)),   # x
        full((n, n)),                                   # adj mask
        full((F, E)), full((1, E)),                     # wemb, bemb
        full((E, E)), full((1, E)),                     # wq, bq
        full((E, E)), full((1, E)),                     # wk, bk
        full((E, E)), full((1, E)),                     # wv, bv
        full((E, ENC)), full((1, ENC)),                 # wg1, bg1
        full((ENC, E)), full((1, E)),                   # wg2, bg2
    ]
    g = pl.pallas_call(
        _gt_node_kernel,
        out_shape=jax.ShapeDtypeStruct((B, n, E), mxu),
        grid_spec=pltpu.PrefetchScalarGridSpec(
            num_scalar_prefetch=0,
            grid=(B,),
            in_specs=gt_in_specs,
            out_specs=pl.BlockSpec((1, n, E), lambda b: (b, 0, 0)),
        ),
        compiler_params=pltpu.CompilerParams(dimension_semantics=("parallel",)),
    )(
        x, adjm,
        params["wemb"].astype(mxu), params["bemb"],
        params["wq"].astype(mxu), params["bq"],
        params["wk"].astype(mxu), params["bk"],
        params["wv"].astype(mxu), params["bv"],
        params["wg1"].astype(mxu), params["bg1"],
        params["wg2"].astype(mxu), params["bg2"],
    )

    # ---------------- stage 2: pairwise FF + mask, (B, i, j) tiled ----------------
    TM, TN, R = _pick_tiles(n)
    grid = (B, n // TM, n // TN)

    w1a = params["w1a"].astype(mxu)               # (E, H)
    w1bT = params["w1b"].T.astype(mxu)            # (H, E)
    b1 = params["b1"].astype(jnp.float32)         # (1, H)
    w2T = params["w2"].T.astype(mxu)              # (C, H)
    b2 = params["b2"].T.astype(jnp.float32)       # (C, 1)

    pair_in_specs = [
        pl.BlockSpec((1, TM, E), lambda b, ib, jb: (b, ib, 0)),   # g row tile
        pl.BlockSpec((1, TN, E), lambda b, ib, jb: (b, jb, 0)),   # g col tile
        pl.BlockSpec((TM, TN), lambda b, ib, jb: (ib, jb)),       # adj mask tile
        pl.BlockSpec((E, H), lambda b, ib, jb: (0, 0)),           # w1a
        pl.BlockSpec((H, E), lambda b, ib, jb: (0, 0)),           # w1b^T
        pl.BlockSpec((1, H), lambda b, ib, jb: (0, 0)),           # b1 (row)
        pl.BlockSpec((C, H), lambda b, ib, jb: (0, 0)),           # w2^T
        pl.BlockSpec((C, 1), lambda b, ib, jb: (0, 0)),           # b2 (column)
    ]
    kernel2 = functools.partial(_pair_ff_kernel, r_chunk=R, hid_dtype=hid_dtype)
    logits = pl.pallas_call(
        kernel2,
        out_shape=jax.ShapeDtypeStruct((B, C, n, n), jnp.float32),
        grid_spec=pltpu.PrefetchScalarGridSpec(
            num_scalar_prefetch=0,
            grid=grid,
            in_specs=pair_in_specs,
            out_specs=pl.BlockSpec((1, C, TM, TN), lambda b, ib, jb: (b, 0, ib, jb)),
            scratch_shapes=[pltpu.VMEM((TM, H), jnp.float32)],
        ),
        compiler_params=pltpu.CompilerParams(
            dimension_semantics=("parallel", "parallel", "parallel")),
    )(g, g, adjm, w1a, w1bT, b1, w2T, b2)

    if i is not None:
        return logits[:, i, :, :]
    return logits


# -----------------------------------------------------------------------------
# Parameters + pure-JAX reference (for the self-check in __main__)
# -----------------------------------------------------------------------------
def init_params(key, feature_num, emb_dim, enc_dim, output_channel):
    """Deterministic synthetic parameters (shapes implied by the module's __init__)."""
    ks = jax.random.split(key, 10)
    hidden = emb_dim * 4

    def lin(k, din, dout):
        scale = 1.0 / math.sqrt(din)
        kw, kb = jax.random.split(k)
        w = jax.random.uniform(kw, (din, dout), jnp.float32, -scale, scale)
        b = jax.random.uniform(kb, (1, dout), jnp.float32, -scale, scale)
        return w, b

    p = {}
    p["wemb"], p["bemb"] = lin(ks[0], feature_num, emb_dim)
    p["wq"], p["bq"] = lin(ks[1], emb_dim, emb_dim)
    p["wk"], p["bk"] = lin(ks[2], emb_dim, emb_dim)
    p["wv"], p["bv"] = lin(ks[3], emb_dim, emb_dim)
    p["wg1"], p["bg1"] = lin(ks[4], emb_dim, enc_dim)
    p["wg2"], p["bg2"] = lin(ks[5], enc_dim, emb_dim)
    # FF(2E -> 4E -> C); first linear split into row/col halves of the pairwise concat.
    w1, b1 = lin(ks[6], 2 * emb_dim, hidden)
    p["w1a"] = w1[:emb_dim]
    p["w1b"] = w1[emb_dim:]
    p["b1"] = b1
    p["w2"], p["b2"] = lin(ks[7], hidden, output_channel)
    return p


def reference_forward(x, adj, params):
    """Pure-JAX (XLA) reference with identical math, for correctness checking."""
    E = params["wemb"].shape[1]
    h0 = x @ params["wemb"] + params["bemb"]
    q = h0 @ params["wq"] + params["bq"]
    k = h0 @ params["wk"] + params["bk"]
    v = h0 @ params["wv"] + params["bv"]
    scores = jnp.einsum("bie,bje->bij", q, k) * (1.0 / math.sqrt(E))
    scores = jnp.where(adj[None, :, :] > 0.0, scores, NEG_FILL)
    atten = jax.nn.softmax(scores, axis=-1)
    h1 = h0 + jnp.einsum("bij,bje->bie", atten, v)
    hg = jnp.maximum(h1 @ params["wg1"] + params["bg1"], 0.0)
    g = h1 + hg @ params["wg2"] + params["bg2"]
    a = g @ params["w1a"]
    b = g @ params["w1b"]
    hidden = jnp.maximum(a[:, :, None, :] + b[:, None, :, :] + params["b1"], 0.0)
    out = hidden @ params["w2"] + params["b2"]          # (B, n, n, C)
    logits = jnp.transpose(out, (0, 3, 1, 2))           # (B, C, n, n)
    return jnp.where(adj[None, None, :, :] > 0.0, logits, NEG_FILL)


if __name__ == "__main__":
    key = jax.random.PRNGKey(0)
    k_adj, k_x, k_param = jax.random.split(key, 3)

    # Small synthetic problem: batch=2, nodes=8, feature_num=4, emb_dim=32,
    # enc_dim=64, output_channel=4.
    B, n, F = 2, 8, 4
    emb_dim, enc_dim, output_channel = 32, 64, 4

    # Adjacency with self-loops so every node attends to at least itself.
    adj = (jax.random.uniform(k_adj, (n, n)) > 0.5).astype(jnp.float32)
    adj = jnp.maximum(adj, jnp.eye(n, dtype=jnp.float32))

    x = jax.random.normal(k_x, (B, n, F), dtype=jnp.float32)
    params = init_params(k_param, F, emb_dim, enc_dim, output_channel)

    # Default fast path: bf16 MXU operands in both stages, f32 accumulation.
    logits = gnngen_forward(x, adj, params)
    jax.block_until_ready(logits)

    assert logits.shape == (B, output_channel, n, n)
    assert logits.dtype == jnp.float32
    mask = adj[None, None, :, :] > 0.0
    assert bool(jnp.all(jnp.where(mask, jnp.abs(logits) < 1e6, logits == NEG_FILL)))

    # Numerical self-check against a pure-JAX reference.
    ref = reference_forward(x, adj, params)
    logits_f32 = gnngen_forward(x, adj, params, mxu_dtype=jnp.float32)
    jax.block_until_ready((ref, logits_f32))

    err_f32 = float(jnp.max(jnp.where(mask, jnp.abs(logits_f32 - ref), 0.0)))
    err_bf16 = float(jnp.max(jnp.where(mask, jnp.abs(logits - ref), 0.0)))
    assert err_f32 < 5e-2, f"f32-path mismatch: {err_f32}"
    assert err_bf16 < 2e-1, f"bf16-path mismatch: {err_bf16}"
    assert bool(jnp.all(jnp.where(mask, True, logits_f32 == NEG_FILL)))

    print("KERNEL_OK")
</pallas_src>

<mosaic_0001>
module attributes {stable_mosaic.version = 11 : i64} {
  func.func @_gt_node_kernel(%arg0: i32, %arg1: memref<1x8x4xf32, #tpu.memory_space<vmem>>, %arg2: memref<8x8xbf16, #tpu.memory_space<vmem>>, %arg3: memref<4x32xbf16, #tpu.memory_space<vmem>>, %arg4: memref<1x32xf32, #tpu.memory_space<vmem>>, %arg5: memref<32x32xbf16, #tpu.memory_space<vmem>>, %arg6: memref<1x32xf32, #tpu.memory_space<vmem>>, %arg7: memref<32x32xbf16, #tpu.memory_space<vmem>>, %arg8: memref<1x32xf32, #tpu.memory_space<vmem>>, %arg9: memref<32x32xbf16, #tpu.memory_space<vmem>>, %arg10: memref<1x32xf32, #tpu.memory_space<vmem>>, %arg11: memref<32x64xbf16, #tpu.memory_space<vmem>>, %arg12: memref<1x64xf32, #tpu.memory_space<vmem>>, %arg13: memref<64x32xbf16, #tpu.memory_space<vmem>>, %arg14: memref<1x32xf32, #tpu.memory_space<vmem>>, %arg15: memref<1x8x32xbf16, #tpu.memory_space<vmem>>) attributes {dimension_semantics = [#tpu.dimension_semantics<parallel>], iteration_bounds = array<i64: 2>, scalar_prefetch = 0 : i64, scratch_operands = 0 : i64, tpu.core_type = #tpu.core_type<tc>, window_params = [{transform_indices = @transform_0, window_bounds = array<i64: 1, 8, 4>}, {pipeline_mode = #tpu.pipeline_mode<synchronous>, transform_indices = @transform_1, window_bounds = array<i64: 8, 8>}, {pipeline_mode = #tpu.pipeline_mode<synchronous>, transform_indices = @transform_2, window_bounds = array<i64: 4, 32>}, {pipeline_mode = #tpu.pipeline_mode<synchronous>, transform_indices = @transform_3, window_bounds = array<i64: 1, 32>}, {pipeline_mode = #tpu.pipeline_mode<synchronous>, transform_indices = @transform_4, window_bounds = array<i64: 32, 32>}, {pipeline_mode = #tpu.pipeline_mode<synchronous>, transform_indices = @transform_5, window_bounds = array<i64: 1, 32>}, {pipeline_mode = #tpu.pipeline_mode<synchronous>, transform_indices = @transform_6, window_bounds = array<i64: 32, 32>}, {pipeline_mode = #tpu.pipeline_mode<synchronous>, transform_indices = @transform_7, window_bounds = array<i64: 1, 32>}, {pipeline_mode = #tpu.pipeline_mode<synchronous>, transform_indices = @transform_8, window_bounds = array<i64: 32, 32>}, {pipeline_mode = #tpu.pipeline_mode<synchronous>, transform_indices = @transform_9, window_bounds = array<i64: 1, 32>}, {pipeline_mode = #tpu.pipeline_mode<synchronous>, transform_indices = @transform_10, window_bounds = array<i64: 32, 64>}, {pipeline_mode = #tpu.pipeline_mode<synchronous>, transform_indices = @transform_11, window_bounds = array<i64: 1, 64>}, {pipeline_mode = #tpu.pipeline_mode<synchronous>, transform_indices = @transform_12, window_bounds = array<i64: 64, 32>}, {pipeline_mode = #tpu.pipeline_mode<synchronous>, transform_indices = @transform_13, window_bounds = array<i64: 1, 32>}, {transform_indices = @transform_14, window_bounds = array<i64: 1, 8, 32>}]} {
    %c0 = arith.constant 0 : index
    %c0_0 = arith.constant 0 : index
    %c0_1 = arith.constant 0 : index
    %0 = vector.load %arg1[%c0, %c0_0, %c0_1] : memref<1x8x4xf32, #tpu.memory_space<vmem>>, vector<1x8x4xf32>
    %1 = vector.shape_cast %0 : vector<1x8x4xf32> to vector<8x4xf32>
    %c0_2 = arith.constant 0 : index
    %c0_3 = arith.constant 0 : index
    %2 = vector.load %arg2[%c0_2, %c0_3] : memref<8x8xbf16, #tpu.memory_space<vmem>>, vector<8x8xbf16>
    %3 = arith.truncf %1 : vector<8x4xf32> to vector<8x4xbf16>
    %c0_4 = arith.constant 0 : index
    %c0_5 = arith.constant 0 : index
    %4 = vector.load %arg3[%c0_4, %c0_5] : memref<4x32xbf16, #tpu.memory_space<vmem>>, vector<4x32xbf16>
    %cst = arith.constant dense<0.000000e+00> : vector<8x32xf32>
    %5 = tpu.matmul %3, %4, %cst {dimension_numbers = #tpu.dot_dimension_numbers<[1], [0], [0], [1], [0, 0, 1, 1], [], []>} : vector<8x4xbf16>, vector<4x32xbf16>, vector<8x32xf32> -> vector<8x32xf32>
    %c0_6 = arith.constant 0 : index
    %c0_7 = arith.constant 0 : index
    %6 = vector.load %arg4[%c0_6, %c0_7] : memref<1x32xf32, #tpu.memory_space<vmem>>, vector<1x32xf32>
    %7 = vector.broadcast %6 : vector<1x32xf32> to vector<8x32xf32>
    %8 = arith.addf %5, %7 : vector<8x32xf32>
    %9 = arith.truncf %8 : vector<8x32xf32> to vector<8x32xbf16>
    %c0_8 = arith.constant 0 : index
    %c0_9 = arith.constant 0 : index
    %10 = vector.load %arg5[%c0_8, %c0_9] : memref<32x32xbf16, #tpu.memory_space<vmem>>, vector<32x32xbf16>
    %cst_10 = arith.constant dense<0.000000e+00> : vector<8x32xf32>
    %11 = tpu.matmul %9, %10, %cst_10 {dimension_numbers = #tpu.dot_dimension_numbers<[1], [0], [0], [1], [0, 0, 1, 1], [], []>} : vector<8x32xbf16>, vector<32x32xbf16>, vector<8x32xf32> -> vector<8x32xf32>
    %c0_11 = arith.constant 0 : index
    %c0_12 = arith.constant 0 : index
    %12 = vector.load %arg6[%c0_11, %c0_12] : memref<1x32xf32, #tpu.memory_space<vmem>>, vector<1x32xf32>
    %13 = vector.broadcast %12 : vector<1x32xf32> to vector<8x32xf32>
    %14 = arith.addf %11, %13 : vector<8x32xf32>
    %c0_13 = arith.constant 0 : index
    %c0_14 = arith.constant 0 : index
    %15 = vector.load %arg7[%c0_13, %c0_14] : memref<32x32xbf16, #tpu.memory_space<vmem>>, vector<32x32xbf16>
    %cst_15 = arith.constant dense<0.000000e+00> : vector<8x32xf32>
    %16 = tpu.matmul %9, %15, %cst_15 {dimension_numbers = #tpu.dot_dimension_numbers<[1], [0], [0], [1], [0, 0, 1, 1], [], []>} : vector<8x32xbf16>, vector<32x32xbf16>, vector<8x32xf32> -> vector<8x32xf32>
    %c0_16 = arith.constant 0 : index
    %c0_17 = arith.constant 0 : index
    %17 = vector.load %arg8[%c0_16, %c0_17] : memref<1x32xf32, #tpu.memory_space<vmem>>, vector<1x32xf32>
    %18 = vector.broadcast %17 : vector<1x32xf32> to vector<8x32xf32>
    %19 = arith.addf %16, %18 : vector<8x32xf32>
    %c0_18 = arith.constant 0 : index
    %c0_19 = arith.constant 0 : index
    %20 = vector.load %arg9[%c0_18, %c0_19] : memref<32x32xbf16, #tpu.memory_space<vmem>>, vector<32x32xbf16>
    %cst_20 = arith.constant dense<0.000000e+00> : vector<8x32xf32>
    %21 = tpu.matmul %9, %20, %cst_20 {dimension_numbers = #tpu.dot_dimension_numbers<[1], [0], [0], [1], [0, 0, 1, 1], [], []>} : vector<8x32xbf16>, vector<32x32xbf16>, vector<8x32xf32> -> vector<8x32xf32>
    %c0_21 = arith.constant 0 : index
    %c0_22 = arith.constant 0 : index
    %22 = vector.load %arg10[%c0_21, %c0_22] : memref<1x32xf32, #tpu.memory_space<vmem>>, vector<1x32xf32>
    %23 = vector.broadcast %22 : vector<1x32xf32> to vector<8x32xf32>
    %24 = arith.addf %21, %23 : vector<8x32xf32>
    %25 = arith.truncf %14 : vector<8x32xf32> to vector<8x32xbf16>
    %26 = arith.truncf %19 : vector<8x32xf32> to vector<8x32xbf16>
    %cst_23 = arith.constant dense<0.000000e+00> : vector<8x8xf32>
    %27 = tpu.matmul %25, %26, %cst_23 {dimension_numbers = #tpu.dot_dimension_numbers<[1], [1], [0], [0], [0, 0, 1, 0], [], []>} : vector<8x32xbf16>, vector<8x32xbf16>, vector<8x8xf32> -> vector<8x8xf32>
    %cst_24 = arith.constant 0.176776692 : f32
    %28 = vector.broadcast %cst_24 : f32 to vector<8x8xf32>
    %29 = arith.mulf %27, %28 : vector<8x8xf32>
    %cst_25 = arith.constant 0.000000e+00 : bf16
    %30 = vector.broadcast %cst_25 : bf16 to vector<8x8xbf16>
    %31 = arith.cmpf ogt, %2, %30 : vector<8x8xbf16>
    %cst_26 = arith.constant -9.000000e+15 : f32
    %32 = vector.broadcast %cst_26 : f32 to vector<8x8xf32>
    %33 = arith.select %31, %29, %32 : vector<8x8xi1>, vector<8x8xf32>
    %cst_27 = arith.constant dense<0xFF800000> : vector<8xf32>
    %34 = vector.multi_reduction <maximumf>, %33, %cst_27 [1] : vector<8x8xf32> to vector<8xf32>
    %35 = vector.shape_cast %34 : vector<8xf32> to vector<8x1xf32>
    %36 = vector.broadcast %35 : vector<8x1xf32> to vector<8x8xf32>
    %37 = arith.subf %33, %36 : vector<8x8xf32>
    %38 = math.exp %37 : vector<8x8xf32>
    %cst_28 = arith.constant dense<0.000000e+00> : vector<8xf32>
    %39 = vector.multi_reduction <add>, %38, %cst_28 [1] : vector<8x8xf32> to vector<8xf32>
    %40 = vector.shape_cast %39 : vector<8xf32> to vector<8x1xf32>
    %41 = tpu.reciprocal %40 {approx = true} : vector<8x1xf32> -> vector<8x1xf32>
    %42 = vector.broadcast %41 : vector<8x1xf32> to vector<8x8xf32>
    %43 = arith.mulf %38, %42 : vector<8x8xf32>
    %44 = arith.truncf %43 : vector<8x8xf32> to vector<8x8xbf16>
    %45 = arith.truncf %24 : vector<8x32xf32> to vector<8x32xbf16>
    %cst_29 = arith.constant dense<0.000000e+00> : vector<8x32xf32>
    %46 = tpu.matmul %44, %45, %cst_29 {dimension_numbers = #tpu.dot_dimension_numbers<[1], [0], [0], [1], [0, 0, 1, 1], [], []>} : vector<8x8xbf16>, vector<8x32xbf16>, vector<8x32xf32> -> vector<8x32xf32>
    %47 = arith.addf %8, %46 : vector<8x32xf32>
    %48 = arith.truncf %47 : vector<8x32xf32> to vector<8x32xbf16>
    %c0_30 = arith.constant 0 : index
    %c0_31 = arith.constant 0 : index
    %49 = vector.load %arg11[%c0_30, %c0_31] : memref<32x64xbf16, #tpu.memory_space<vmem>>, vector<32x64xbf16>
    %cst_32 = arith.constant dense<0.000000e+00> : vector<8x64xf32>
    %50 = tpu.matmul %48, %49, %cst_32 {dimension_numbers = #tpu.dot_dimension_numbers<[1], [0], [0], [1], [0, 0, 1, 1], [], []>} : vector<8x32xbf16>, vector<32x64xbf16>, vector<8x64xf32> -> vector<8x64xf32>
    %c0_33 = arith.constant 0 : index
    %c0_34 = arith.constant 0 : index
    %51 = vector.load %arg12[%c0_33, %c0_34] : memref<1x64xf32, #tpu.memory_space<vmem>>, vector<1x64xf32>
    %52 = vector.broadcast %51 : vector<1x64xf32> to vector<8x64xf32>
    %53 = arith.addf %50, %52 : vector<8x64xf32>
    %cst_35 = arith.constant 0.000000e+00 : f32
    %54 = vector.broadcast %cst_35 : f32 to vector<8x64xf32>
    %55 = arith.maximumf %53, %54 : vector<8x64xf32>
    %56 = arith.truncf %55 : vector<8x64xf32> to vector<8x64xbf16>
    %c0_36 = arith.constant 0 : index
    %c0_37 = arith.constant 0 : index
    %57 = vector.load %arg13[%c0_36, %c0_37] : memref<64x32xbf16, #tpu.memory_space<vmem>>, vector<64x32xbf16>
    %cst_38 = arith.constant dense<0.000000e+00> : vector<8x32xf32>
    %58 = tpu.matmul %56, %57, %cst_38 {dimension_numbers = #tpu.dot_dimension_numbers<[1], [0], [0], [1], [0, 0, 1, 1], [], []>} : vector<8x64xbf16>, vector<64x32xbf16>, vector<8x32xf32> -> vector<8x32xf32>
    %59 = arith.addf %47, %58 : vector<8x32xf32>
    %c0_39 = arith.constant 0 : index
    %c0_40 = arith.constant 0 : index
    %60 = vector.load %arg14[%c0_39, %c0_40] : memref<1x32xf32, #tpu.memory_space<vmem>>, vector<1x32xf32>
    %61 = vector.broadcast %60 : vector<1x32xf32> to vector<8x32xf32>
    %62 = arith.addf %59, %61 : vector<8x32xf32>
    %63 = arith.truncf %62 : vector<8x32xf32> to vector<8x32xbf16>
    %c0_41 = arith.constant 0 : index
    %c0_42 = arith.constant 0 : index
    %c0_43 = arith.constant 0 : index
    %64 = vector.load %arg15[%c0_41, %c0_42, %c0_43] : memref<1x8x32xbf16, #tpu.memory_space<vmem>>, vector<1x8x32xbf16>
    %65 = vector.shape_cast %64 : vector<1x8x32xbf16> to vector<8x32xbf16>
    %66 = vector.shape_cast %63 : vector<8x32xbf16> to vector<1x8x32xbf16>
    tpu.vector_store %arg15[%c0_41, %c0_42, %c0_43], %66 {strides = array<i32>} : memref<1x8x32xbf16, #tpu.memory_space<vmem>>, vector<1x8x32xbf16>,
    return
  }
  func.func @transform_0(%arg0: i32) -> (i32, i32, i32) {
    %c0_i32 = arith.constant 0 : i32
    %c0_i32_0 = arith.constant 0 : i32
    %c0_i32_1 = arith.constant 0 : i32
    return %arg0, %c0_i32, %c0_i32_0 : i32, i32, i32
  }
  func.func @transform_1(%arg0: i32) -> (i32, i32) {
    %c0_i32 = arith.constant 0 : i32
    %c0_i32_0 = arith.constant 0 : i32
    %c0_i32_1 = arith.constant 0 : i32
    return %c0_i32, %c0_i32_0 : i32, i32
  }
  func.func @transform_2(%arg0: i32) -> (i32, i32) {
    %c0_i32 = arith.constant 0 : i32
    %c0_i32_0 = arith.constant 0 : i32
    %c0_i32_1 = arith.constant 0 : i32
    return %c0_i32, %c0_i32_0 : i32, i32
  }
  func.func @transform_3(%arg0: i32) -> (i32, i32) {
    %c0_i32 = arith.constant 0 : i32
    %c0_i32_0 = arith.constant 0 : i32
    %c0_i32_1 = arith.constant 0 : i32
    return %c0_i32, %c0_i32_0 : i32, i32
  }
  func.func @transform_4(%arg0: i32) -> (i32, i32) {
    %c0_i32 = arith.constant 0 : i32
    %c0_i32_0 = arith.constant 0 : i32
    %c0_i32_1 = arith.constant 0 : i32
    return %c0_i32, %c0_i32_0 : i32, i32
  }
  func.func @transform_5(%arg0: i32) -> (i32, i32) {
    %c0_i32 = arith.constant 0 : i32
    %c0_i32_0 = arith.constant 0 : i32
    %c0_i32_1 = arith.constant 0 : i32
    return %c0_i32, %c0_i32_0 : i32, i32
  }
  func.func @transform_6(%arg0: i32) -> (i32, i32) {
    %c0_i32 = arith.constant 0 : i32
    %c0_i32_0 = arith.constant 0 : i32
    %c0_i32_1 = arith.constant 0 : i32
    return %c0_i32, %c0_i32_0 : i32, i32
  }
  func.func @transform_7(%arg0: i32) -> (i32, i32) {
    %c0_i32 = arith.constant 0 : i32
    %c0_i32_0 = arith.constant 0 : i32
    %c0_i32_1 = arith.constant 0 : i32
    return %c0_i32, %c0_i32_0 : i32, i32
  }
  func.func @transform_8(%arg0: i32) -> (i32, i32) {
    %c0_i32 = arith.constant 0 : i32
    %c0_i32_0 = arith.constant 0 : i32
    %c0_i32_1 = arith.constant 0 : i32
    return %c0_i32, %c0_i32_0 : i32, i32
  }
  func.func @transform_9(%arg0: i32) -> (i32, i32) {
    %c0_i32 = arith.constant 0 : i32
    %c0_i32_0 = arith.constant 0 : i32
    %c0_i32_1 = arith.constant 0 : i32
    return %c0_i32, %c0_i32_0 : i32, i32
  }
  func.func @transform_10(%arg0: i32) -> (i32, i32) {
    %c0_i32 = arith.constant 0 : i32
    %c0_i32_0 = arith.constant 0 : i32
    %c0_i32_1 = arith.constant 0 : i32
    return %c0_i32, %c0_i32_0 : i32, i32
  }
  func.func @transform_11(%arg0: i32) -> (i32, i32) {
    %c0_i32 = arith.constant 0 : i32
    %c0_i32_0 = arith.constant 0 : i32
    %c0_i32_1 = arith.constant 0 : i32
    return %c0_i32, %c0_i32_0 : i32, i32
  }
  func.func @transform_12(%arg0: i32) -> (i32, i32) {
    %c0_i32 = arith.constant 0 : i32
    %c0_i32_0 = arith.constant 0 : i32
    %c0_i32_1 = arith.constant 0 : i32
    return %c0_i32, %c0_i32_0 : i32, i32
  }
  func.func @transform_13(%arg0: i32) -> (i32, i32) {
    %c0_i32 = arith.constant 0 : i32
    %c0_i32_0 = arith.constant 0 : i32
    %c0_i32_1 = arith.constant 0 : i32
    return %c0_i32, %c0_i32_0 : i32, i32
  }
  func.func @transform_14(%arg0: i32) -> (i32, i32, i32) {
    %c0_i32 = arith.constant 0 : i32
    %c0_i32_0 = arith.constant 0 : i32
    %c0_i32_1 = arith.constant 0 : i32
    return %arg0, %c0_i32, %c0_i32_0 : i32, i32, i32
  }
}

module attributes {stable_mosaic.version = 11 : i64} {
  func.func @_pair_ff_kernel(%arg0: i32, %arg1: i32, %arg2: i32, %arg3: memref<1x8x32xbf16, #tpu.memory_space<vmem>>, %arg4: memref<1x8x32xbf16, #tpu.memory_space<vmem>>, %arg5: memref<8x8xbf16, #tpu.memory_space<vmem>>, %arg6: memref<32x128xbf16, #tpu.memory_space<vmem>>, %arg7: memref<128x32xbf16, #tpu.memory_space<vmem>>, %arg8: memref<1x128xf32, #tpu.memory_space<vmem>>, %arg9: memref<4x128xbf16, #tpu.memory_space<vmem>>, %arg10: memref<4x1xf32, #tpu.memory_space<vmem>>, %arg11: memref<1x4x8x8xf32, #tpu.memory_space<vmem>>, %arg12: memref<8x128xf32, #tpu.memory_space<vmem>>) attributes {dimension_semantics = [#tpu.dimension_semantics<parallel>, #tpu.dimension_semantics<parallel>, #tpu.dimension_semantics<parallel>], iteration_bounds = array<i64: 2, 1, 1>, scalar_prefetch = 0 : i64, scratch_operands = 1 : i64, tpu.core_type = #tpu.core_type<tc>, window_params = [{transform_indices = @transform_0, window_bounds = array<i64: 1, 8, 32>}, {transform_indices = @transform_1, window_bounds = array<i64: 1, 8, 32>}, {transform_indices = @transform_2, window_bounds = array<i64: 8, 8>}, {pipeline_mode = #tpu.pipeline_mode<synchronous>, transform_indices = @transform_3, window_bounds = array<i64: 32, 128>}, {pipeline_mode = #tpu.pipeline_mode<synchronous>, transform_indices = @transform_4, window_bounds = array<i64: 128, 32>}, {pipeline_mode = #tpu.pipeline_mode<synchronous>, transform_indices = @transform_5, window_bounds = array<i64: 1, 128>}, {pipeline_mode = #tpu.pipeline_mode<synchronous>, transform_indices = @transform_6, window_bounds = array<i64: 4, 128>}, {pipeline_mode = #tpu.pipeline_mode<synchronous>, transform_indices = @transform_7, window_bounds = array<i64: 4, 1>}, {transform_indices = @transform_8, window_bounds = array<i64: 1, 4, 8, 8>}]} {
    %c0 = arith.constant 0 : index
    %c0_0 = arith.constant 0 : index
    %0 = vector.load %arg9[%c0, %c0_0] : memref<4x128xbf16, #tpu.memory_space<vmem>>, vector<4x128xbf16>
    %c0_1 = arith.constant 0 : index
    %c0_2 = arith.constant 0 : index
    %1 = vector.load %arg10[%c0_1, %c0_2] : memref<4x1xf32, #tpu.memory_space<vmem>>, vector<4x1xf32>
    %c0_3 = arith.constant 0 : index
    %c0_4 = arith.constant 0 : index
    %c0_5 = arith.constant 0 : index
    %2 = vector.load %arg3[%c0_3, %c0_4, %c0_5] : memref<1x8x32xbf16, #tpu.memory_space<vmem>>, vector<1x8x32xbf16>
    %3 = vector.shape_cast %2 : vector<1x8x32xbf16> to vector<8x32xbf16>
    %c0_6 = arith.constant 0 : index
    %c0_7 = arith.constant 0 : index
    %4 = vector.load %arg6[%c0_6, %c0_7] : memref<32x128xbf16, #tpu.memory_space<vmem>>, vector<32x128xbf16>
    %cst = arith.constant dense<0.000000e+00> : vector<8x128xf32>
    %5 = tpu.matmul %3, %4, %cst {dimension_numbers = #tpu.dot_dimension_numbers<[1], [0], [0], [1], [0, 0, 1, 1], [], []>} : vector<8x32xbf16>, vector<32x128xbf16>, vector<8x128xf32> -> vector<8x128xf32>
    %c0_8 = arith.constant 0 : index
    %c0_9 = arith.constant 0 : index
    %6 = vector.load %arg8[%c0_8, %c0_9] : memref<1x128xf32, #tpu.memory_space<vmem>>, vector<1x128xf32>
    %7 = vector.broadcast %6 : vector<1x128xf32> to vector<8x128xf32>
    %8 = arith.addf %5, %7 : vector<8x128xf32>
    %c0_10 = arith.constant 0 : index
    %c0_11 = arith.constant 0 : index
    %9 = vector.load %arg12[%c0_10, %c0_11] : memref<8x128xf32, #tpu.memory_space<vmem>>, vector<8x128xf32>
    tpu.vector_store %arg12[%c0_10, %c0_11], %8 {strides = array<i32>} : memref<8x128xf32, #tpu.memory_space<vmem>>, vector<8x128xf32>,
    %c0_12 = arith.constant 0 : index
    %c0_13 = arith.constant 0 : index
    %10 = vector.load %arg7[%c0_12, %c0_13] : memref<128x32xbf16, #tpu.memory_space<vmem>>, vector<128x32xbf16>
    %c0_14 = arith.constant 0 : index
    %c0_15 = arith.constant 0 : index
    %c0_16 = arith.constant 0 : index
    %11 = vector.load %arg4[%c0_14, %c0_15, %c0_16] : memref<1x8x32xbf16, #tpu.memory_space<vmem>>, vector<1x8x32xbf16>
    %12 = vector.shape_cast %11 : vector<1x8x32xbf16> to vector<8x32xbf16>
    %cst_17 = arith.constant dense<0.000000e+00> : vector<128x8xf32>
    %13 = tpu.matmul %10, %12, %cst_17 {dimension_numbers = #tpu.dot_dimension_numbers<[1], [1], [0], [0], [0, 0, 1, 0], [], []>} : vector<128x32xbf16>, vector<8x32xbf16>, vector<128x8xf32> -> vector<128x8xf32>
    %14 = arith.truncf %13 : vector<128x8xf32> to vector<128x8xbf16>
    %c0_i32 = arith.constant 0 : i32
    %c8_i32 = arith.constant 8 : i32
    %15 = arith.muli %c0_i32, %c8_i32 : i32
    %16 = tpu.assume_multiple %15, 8 : i32
    %17 = arith.index_cast %16 : i32 to index
    %c0_18 = arith.constant 0 : index
    %18 = vector.load %arg12[%17, %c0_18] : memref<8x128xf32, #tpu.memory_space<vmem>>, vector<8x128xf32>
    %19 = tpu.transpose %18, [1, 0] : vector<8x128xf32> -> vector<128x8xf32>
    %20 = arith.truncf %19 : vector<128x8xf32> to vector<128x8xbf16>
    %21 = arith.index_cast %16 : i32 to index
    %c0_19 = arith.constant 0 : index
    %22 = vector.load %arg5[%21, %c0_19] : memref<8x8xbf16, #tpu.memory_space<vmem>>, vector<8x8xbf16>
    %23 = vector.extract_strided_slice %20 {offsets = [0, 0], sizes = [128, 1], strides = [1, 1]} : vector<128x8xbf16> to vector<128x1xbf16>
    %24 = vector.broadcast %23 : vector<128x1xbf16> to vector<128x8xbf16>
    %25 = arith.addf %24, %14 : vector<128x8xbf16>
    %cst_20 = arith.constant 0.000000e+00 : bf16
    %26 = vector.broadcast %cst_20 : bf16 to vector<128x8xbf16>
    %27 = arith.maximumf %25, %26 : vector<128x8xbf16>
    %cst_21 = arith.constant dense<0.000000e+00> : vector<4x8xf32>
    %28 = tpu.matmul %0, %27, %cst_21 {dimension_numbers = #tpu.dot_dimension_numbers<[1], [0], [0], [1], [0, 0, 1, 1], [], []>} : vector<4x128xbf16>, vector<128x8xbf16>, vector<4x8xf32> -> vector<4x8xf32>
    %29 = vector.broadcast %1 : vector<4x1xf32> to vector<4x8xf32>
    %30 = arith.addf %28, %29 : vector<4x8xf32>
    %31 = vector.extract_strided_slice %22 {offsets = [0, 0], sizes = [1, 8], strides = [1, 1]} : vector<8x8xbf16> to vector<1x8xbf16>
    %cst_22 = arith.constant 0.000000e+00 : bf16
    %32 = vector.broadcast %cst_22 : bf16 to vector<1x8xbf16>
    %33 = arith.cmpf ogt, %31, %32 : vector<1x8xbf16>
    %cst_23 = arith.constant -9.000000e+15 : f32
    %34 = vector.shape_cast %33 : vector<1x8xi1> to vector<1x8xi1>
    %35 = vector.broadcast %34 : vector<1x8xi1> to vector<4x8xi1>
    %36 = vector.broadcast %cst_23 : f32 to vector<4x8xf32>
    %37 = arith.select %35, %30, %36 : vector<4x8xi1>, vector<4x8xf32>
    %38 = vector.extract_strided_slice %20 {offsets = [0, 1], sizes = [128, 1], strides = [1, 1]} : vector<128x8xbf16> to vector<128x1xbf16>
    %39 = vector.broadcast %38 : vector<128x1xbf16> to vector<128x8xbf16>
    %40 = arith.addf %39, %14 : vector<128x8xbf16>
    %cst_24 = arith.constant 0.000000e+00 : bf16
    %41 = vector.broadcast %cst_24 : bf16 to vector<128x8xbf16>
    %42 = arith.maximumf %40, %41 : vector<128x8xbf16>
    %cst_25 = arith.constant dense<0.000000e+00> : vector<4x8xf32>
    %43 = tpu.matmul %0, %42, %cst_25 {dimension_numbers = #tpu.dot_dimension_numbers<[1], [0], [0], [1], [0, 0, 1, 1], [], []>} : vector<4x128xbf16>, vector<128x8xbf16>, vector<4x8xf32> -> vector<4x8xf32>
    %44 = vector.broadcast %1 : vector<4x1xf32> to vector<4x8xf32>
    %45 = arith.addf %43, %44 : vector<4x8xf32>
    %46 = vector.extract_strided_slice %22 {offsets = [1, 0], sizes = [1, 8], strides = [1, 1]} : vector<8x8xbf16> to vector<1x8xbf16>
    %cst_26 = arith.constant 0.000000e+00 : bf16
    %47 = vector.broadcast %cst_26 : bf16 to vector<1x8xbf16>
    %48 = arith.cmpf ogt, %46, %47 : vector<1x8xbf16>
    %cst_27 = arith.constant -9.000000e+15 : f32
    %49 = vector.shape_cast %48 : vector<1x8xi1> to vector<1x8xi1>
    %50 = vector.broadcast %49 : vector<1x8xi1> to vector<4x8xi1>
    %51 = vector.broadcast %cst_27 : f32 to vector<4x8xf32>
    %52 = arith.select %50, %45, %51 : vector<4x8xi1>, vector<4x8xf32>
    %53 = vector.extract_strided_slice %20 {offsets = [0, 2], sizes = [128, 1], strides = [1, 1]} : vector<128x8xbf16> to vector<128x1xbf16>
    %54 = vector.broadcast %53 : vector<128x1xbf16> to vector<128x8xbf16>
    %55 = arith.addf %54, %14 : vector<128x8xbf16>
    %cst_28 = arith.constant 0.000000e+00 : bf16
    %56 = vector.broadcast %cst_28 : bf16 to vector<128x8xbf16>
    %57 = arith.maximumf %55, %56 : vector<128x8xbf16>
    %cst_29 = arith.constant dense<0.000000e+00> : vector<4x8xf32>
    %58 = tpu.matmul %0, %57, %cst_29 {dimension_numbers = #tpu.dot_dimension_numbers<[1], [0], [0], [1], [0, 0, 1, 1], [], []>} : vector<4x128xbf16>, vector<128x8xbf16>, vector<4x8xf32> -> vector<4x8xf32>
    %59 = vector.broadcast %1 : vector<4x1xf32> to vector<4x8xf32>
    %60 = arith.addf %58, %59 : vector<4x8xf32>
    %61 = vector.extract_strided_slice %22 {offsets = [2, 0], sizes = [1, 8], strides = [1, 1]} : vector<8x8xbf16> to vector<1x8xbf16>
    %cst_30 = arith.constant 0.000000e+00 : bf16
    %62 = vector.broadcast %cst_30 : bf16 to vector<1x8xbf16>
    %63 = arith.cmpf ogt, %61, %62 : vector<1x8xbf16>
    %cst_31 = arith.constant -9.000000e+15 : f32
    %64 = vector.shape_cast %63 : vector<1x8xi1> to vector<1x8xi1>
    %65 = vector.broadcast %64 : vector<1x8xi1> to vector<4x8xi1>
    %66 = vector.broadcast %cst_31 : f32 to vector<4x8xf32>
    %67 = arith.select %65, %60, %66 : vector<4x8xi1>, vector<4x8xf32>
    %68 = vector.extract_strided_slice %20 {offsets = [0, 3], sizes = [128, 1], strides = [1, 1]} : vector<128x8xbf16> to vector<128x1xbf16>
    %69 = vector.broadcast %68 : vector<128x1xbf16> to vector<128x8xbf16>
    %70 = arith.addf %69, %14 : vector<128x8xbf16>
    %cst_32 = arith.constant 0.000000e+00 : bf16
    %71 = vector.broadcast %cst_32 : bf16 to vector<128x8xbf16>
    %72 = arith.maximumf %70, %71 : vector<128x8xbf16>
    %cst_33 = arith.constant dense<0.000000e+00> : vector<4x8xf32>
    %73 = tpu.matmul %0, %72, %cst_33 {dimension_numbers = #tpu.dot_dimension_numbers<[1], [0], [0], [1], [0, 0, 1, 1], [], []>} : vector<4x128xbf16>, vector<128x8xbf16>, vector<4x8xf32> -> vector<4x8xf32>
    %74 = vector.broadcast %1 : vector<4x1xf32> to vector<4x8xf32>
    %75 = arith.addf %73, %74 : vector<4x8xf32>
    %76 = vector.extract_strided_slice %22 {offsets = [3, 0], sizes = [1, 8], strides = [1, 1]} : vector<8x8xbf16> to vector<1x8xbf16>
    %cst_34 = arith.constant 0.000000e+00 : bf16
    %77 = vector.broadcast %cst_34 : bf16 to vector<1x8xbf16>
    %78 = arith.cmpf ogt, %76, %77 : vector<1x8xbf16>
    %cst_35 = arith.constant -9.000000e+15 : f32
    %79 = vector.shape_cast %78 : vector<1x8xi1> to vector<1x8xi1>
    %80 = vector.broadcast %79 : vector<1x8xi1> to vector<4x8xi1>
    %81 = vector.broadcast %cst_35 : f32 to vector<4x8xf32>
    %82 = arith.select %80, %75, %81 : vector<4x8xi1>, vector<4x8xf32>
    %83 = vector.extract_strided_slice %20 {offsets = [0, 4], sizes = [128, 1], strides = [1, 1]} : vector<128x8xbf16> to vector<128x1xbf16>
    %84 = vector.broadcast %83 : vector<128x1xbf16> to vector<128x8xbf16>
    %85 = arith.addf %84, %14 : vector<128x8xbf16>
    %cst_36 = arith.constant 0.000000e+00 : bf16
    %86 = vector.broadcast %cst_36 : bf16 to vector<128x8xbf16>
    %87 = arith.maximumf %85, %86 : vector<128x8xbf16>
    %cst_37 = arith.constant dense<0.000000e+00> : vector<4x8xf32>
    %88 = tpu.matmul %0, %87, %cst_37 {dimension_numbers = #tpu.dot_dimension_numbers<[1], [0], [0], [1], [0, 0, 1, 1], [], []>} : vector<4x128xbf16>, vector<128x8xbf16>, vector<4x8xf32> -> vector<4x8xf32>
    %89 = vector.broadcast %1 : vector<4x1xf32> to vector<4x8xf32>
    %90 = arith.addf %88, %89 : vector<4x8xf32>
    %91 = vector.extract_strided_slice %22 {offsets = [4, 0], sizes = [1, 8], strides = [1, 1]} : vector<8x8xbf16> to vector<1x8xbf16>
    %cst_38 = arith.constant 0.000000e+00 : bf16
    %92 = vector.broadcast %cst_38 : bf16 to vector<1x8xbf16>
    %93 = arith.cmpf ogt, %91, %92 : vector<1x8xbf16>
    %cst_39 = arith.constant -9.000000e+15 : f32
    %94 = vector.shape_cast %93 : vector<1x8xi1> to vector<1x8xi1>
    %95 = vector.broadcast %94 : vector<1x8xi1> to vector<4x8xi1>
    %96 = vector.broadcast %cst_39 : f32 to vector<4x8xf32>
    %97 = arith.select %95, %90, %96 : vector<4x8xi1>, vector<4x8xf32>
    %98 = vector.extract_strided_slice %20 {offsets = [0, 5], sizes = [128, 1], strides = [1, 1]} : vector<128x8xbf16> to vector<128x1xbf16>
    %99 = vector.broadcast %98 : vector<128x1xbf16> to vector<128x8xbf16>
    %100 = arith.addf %99, %14 : vector<128x8xbf16>
    %cst_40 = arith.constant 0.000000e+00 : bf16
    %101 = vector.broadcast %cst_40 : bf16 to vector<128x8xbf16>
    %102 = arith.maximumf %100, %101 : vector<128x8xbf16>
    %cst_41 = arith.constant dense<0.000000e+00> : vector<4x8xf32>
    %103 = tpu.matmul %0, %102, %cst_41 {dimension_numbers = #tpu.dot_dimension_numbers<[1], [0], [0], [1], [0, 0, 1, 1], [], []>} : vector<4x128xbf16>, vector<128x8xbf16>, vector<4x8xf32> -> vector<4x8xf32>
    %104 = vector.broadcast %1 : vector<4x1xf32> to vector<4x8xf32>
    %105 = arith.addf %103, %104 : vector<4x8xf32>
    %106 = vector.extract_strided_slice %22 {offsets = [5, 0], sizes = [1, 8], strides = [1, 1]} : vector<8x8xbf16> to vector<1x8xbf16>
    %cst_42 = arith.constant 0.000000e+00 : bf16
    %107 = vector.broadcast %cst_42 : bf16 to vector<1x8xbf16>
    %108 = arith.cmpf ogt, %106, %107 : vector<1x8xbf16>
    %cst_43 = arith.constant -9.000000e+15 : f32
    %109 = vector.shape_cast %108 : vector<1x8xi1> to vector<1x8xi1>
    %110 = vector.broadcast %109 : vector<1x8xi1> to vector<4x8xi1>
    %111 = vector.broadcast %cst_43 : f32 to vector<4x8xf32>
    %112 = arith.select %110, %105, %111 : vector<4x8xi1>, vector<4x8xf32>
    %113 = vector.extract_strided_slice %20 {offsets = [0, 6], sizes = [128, 1], strides = [1, 1]} : vector<128x8xbf16> to vector<128x1xbf16>
    %114 = vector.broadcast %113 : vector<128x1xbf16> to vector<128x8xbf16>
    %115 = arith.addf %114, %14 : vector<128x8xbf16>
    %cst_44 = arith.constant 0.000000e+00 : bf16
    %116 = vector.broadcast %cst_44 : bf16 to vector<128x8xbf16>
    %117 = arith.maximumf %115, %116 : vector<128x8xbf16>
    %cst_45 = arith.constant dense<0.000000e+00> : vector<4x8xf32>
    %118 = tpu.matmul %0, %117, %cst_45 {dimension_numbers = #tpu.dot_dimension_numbers<[1], [0], [0], [1], [0, 0, 1, 1], [], []>} : vector<4x128xbf16>, vector<128x8xbf16>, vector<4x8xf32> -> vector<4x8xf32>
    %119 = vector.broadcast %1 : vector<4x1xf32> to vector<4x8xf32>
    %120 = arith.addf %118, %119 : vector<4x8xf32>
    %121 = vector.extract_strided_slice %22 {offsets = [6, 0], sizes = [1, 8], strides = [1, 1]} : vector<8x8xbf16> to vector<1x8xbf16>
    %cst_46 = arith.constant 0.000000e+00 : bf16
    %122 = vector.broadcast %cst_46 : bf16 to vector<1x8xbf16>
    %123 = arith.cmpf ogt, %121, %122 : vector<1x8xbf16>
    %cst_47 = arith.constant -9.000000e+15 : f32
    %124 = vector.shape_cast %123 : vector<1x8xi1> to vector<1x8xi1>
    %125 = vector.broadcast %124 : vector<1x8xi1> to vector<4x8xi1>
    %126 = vector.broadcast %cst_47 : f32 to vector<4x8xf32>
    %127 = arith.select %125, %120, %126 : vector<4x8xi1>, vector<4x8xf32>
    %128 = vector.extract_strided_slice %20 {offsets = [0, 7], sizes = [128, 1], strides = [1, 1]} : vector<128x8xbf16> to vector<128x1xbf16>
    %129 = vector.broadcast %128 : vector<128x1xbf16> to vector<128x8xbf16>
    %130 = arith.addf %129, %14 : vector<128x8xbf16>
    %cst_48 = arith.constant 0.000000e+00 : bf16
    %131 = vector.broadcast %cst_48 : bf16 to vector<128x8xbf16>
    %132 = arith.maximumf %130, %131 : vector<128x8xbf16>
    %cst_49 = arith.constant dense<0.000000e+00> : vector<4x8xf32>
    %133 = tpu.matmul %0, %132, %cst_49 {dimension_numbers = #tpu.dot_dimension_numbers<[1], [0], [0], [1], [0, 0, 1, 1], [], []>} : vector<4x128xbf16>, vector<128x8xbf16>, vector<4x8xf32> -> vector<4x8xf32>
    %134 = vector.broadcast %1 : vector<4x1xf32> to vector<4x8xf32>
    %135 = arith.addf %133, %134 : vector<4x8xf32>
    %136 = vector.extract_strided_slice %22 {offsets = [7, 0], sizes = [1, 8], strides = [1, 1]} : vector<8x8xbf16> to vector<1x8xbf16>
    %cst_50 = arith.constant 0.000000e+00 : bf16
    %137 = vector.broadcast %cst_50 : bf16 to vector<1x8xbf16>
    %138 = arith.cmpf ogt, %136, %137 : vector<1x8xbf16>
    %cst_51 = arith.constant -9.000000e+15 : f32
    %139 = vector.shape_cast %138 : vector<1x8xi1> to vector<1x8xi1>
    %140 = vector.broadcast %139 : vector<1x8xi1> to vector<4x8xi1>
    %141 = vector.broadcast %cst_51 : f32 to vector<4x8xf32>
    %142 = arith.select %140, %135, %141 : vector<4x8xi1>, vector<4x8xf32>
    %143 = vector.shape_cast %37 : vector<4x8xf32> to vector<4x1x8xf32>
    %144 = vector.shape_cast %52 : vector<4x8xf32> to vector<4x1x8xf32>
    %145 = vector.shape_cast %67 : vector<4x8xf32> to vector<4x1x8xf32>
    %146 = vector.shape_cast %82 : vector<4x8xf32> to vector<4x1x8xf32>
    %147 = vector.shape_cast %97 : vector<4x8xf32> to vector<4x1x8xf32>
    %148 = vector.shape_cast %112 : vector<4x8xf32> to vector<4x1x8xf32>
    %149 = vector.shape_cast %127 : vector<4x8xf32> to vector<4x1x8xf32>
    %150 = vector.shape_cast %142 : vector<4x8xf32> to vector<4x1x8xf32>
    %151 = tpu.concatenate %143, %144, %145, %146, %147, %148, %149, %150 in 1 : vector<4x1x8xf32>, vector<4x1x8xf32>, vector<4x1x8xf32>, vector<4x1x8xf32>, vector<4x1x8xf32>, vector<4x1x8xf32>, vector<4x1x8xf32>, vector<4x1x8xf32> -> vector<4x8x8xf32>
    %c0_52 = arith.constant 0 : index
    %c0_53 = arith.constant 0 : index
    %152 = arith.index_cast %16 : i32 to index
    %c0_54 = arith.constant 0 : index
    %153 = vector.load %arg11[%c0_52, %c0_53, %152, %c0_54] : memref<1x4x8x8xf32, #tpu.memory_space<vmem>>, vector<1x4x8x8xf32>
    %154 = vector.shape_cast %153 : vector<1x4x8x8xf32> to vector<4x8x8xf32>
    %155 = vector.shape_cast %151 : vector<4x8x8xf32> to vector<1x4x8x8xf32>
    tpu.vector_store %arg11[%c0_52, %c0_53, %152, %c0_54], %155 {strides = array<i32>} : memref<1x4x8x8xf32, #tpu.memory_space<vmem>>, vector<1x4x8x8xf32>,
    %c1_i32 = arith.constant 1 : i32
    return
  }
  func.func @transform_0(%arg0: i32, %arg1: i32, %arg2: i32) -> (i32, i32, i32) {
    %c0_i32 = arith.constant 0 : i32
    %c0_i32_0 = arith.constant 0 : i32
    return %arg0, %arg1, %c0_i32 : i32, i32, i32
  }
  func.func @transform_1(%arg0: i32, %arg1: i32, %arg2: i32) -> (i32, i32, i32) {
    %c0_i32 = arith.constant 0 : i32
    %c0_i32_0 = arith.constant 0 : i32
    return %arg0, %arg2, %c0_i32 : i32, i32, i32
  }
  func.func @transform_2(%arg0: i32, %arg1: i32, %arg2: i32) -> (i32, i32) {
    %c0_i32 = arith.constant 0 : i32
    return %arg1, %arg2 : i32, i32
  }
  func.func @transform_3(%arg0: i32, %arg1: i32, %arg2: i32) -> (i32, i32) {
    %c0_i32 = arith.constant 0 : i32
    %c0_i32_0 = arith.constant 0 : i32
    %c0_i32_1 = arith.constant 0 : i32
    return %c0_i32, %c0_i32_0 : i32, i32
  }
  func.func @transform_4(%arg0: i32, %arg1: i32, %arg2: i32) -> (i32, i32) {
    %c0_i32 = arith.constant 0 : i32
    %c0_i32_0 = arith.constant 0 : i32
    %c0_i32_1 = arith.constant 0 : i32
    return %c0_i32, %c0_i32_0 : i32, i32
  }
  func.func @transform_5(%arg0: i32, %arg1: i32, %arg2: i32) -> (i32, i32) {
    %c0_i32 = arith.constant 0 : i32
    %c0_i32_0 = arith.constant 0 : i32
    %c0_i32_1 = arith.constant 0 : i32
    return %c0_i32, %c0_i32_0 : i32, i32
  }
  func.func @transform_6(%arg0: i32, %arg1: i32, %arg2: i32) -> (i32, i32) {
    %c0_i32 = arith.constant 0 : i32
    %c0_i32_0 = arith.constant 0 : i32
    %c0_i32_1 = arith.constant 0 : i32
    return %c0_i32, %c0_i32_0 : i32, i32
  }
  func.func @transform_7(%arg0: i32, %arg1: i32, %arg2: i32) -> (i32, i32) {
    %c0_i32 = arith.constant 0 : i32
    %c0_i32_0 = arith.constant 0 : i32
    %c0_i32_1 = arith.constant 0 : i32
    return %c0_i32, %c0_i32_0 : i32, i32
  }
  func.func @transform_8(%arg0: i32, %arg1: i32, %arg2: i32) -> (i32, i32, i32, i32) {
    %c0_i32 = arith.constant 0 : i32
    %c0_i32_0 = arith.constant 0 : i32
    return %arg0, %c0_i32, %arg1, %arg2 : i32, i32, i32, i32
  }
}

</mosaic_0001>

<bundles_post_ra>
// kernel: gnngen_forward.2
= control target key start
LH: loop header
LB: loop body
LE: loop exit
PB: predicated region body
PF: predicated region fallthrough
CT: control target
= control target key end

     0   :  { %s1278_s29 = smov 0   ;;  %s1404_s0 = inlined_call_operand.vmem [shape: f32[2,8,4], index: 0, kind: input, shape index: {}]   ;;  %s1405_s1 = inlined_call_operand.vmem [shape: bf16[8,8], index: 1, kind: input, shape index: {}]   ;;  %s1406_s2 = inlined_call_operand.vmem [shape: bf16[4,32], index: 2, kind: input, shape index: {}]   ;;  %s1407_s3 = inlined_call_operand.vmem [shape: f32[1,32], index: 3, kind: input, shape index: {}]   ;;  %s1408_s4 = inlined_call_operand.vmem [shape: bf16[32,32], index: 4, kind: input, shape index: {}]   ;;  %s1409_s5 = inlined_call_operand.vmem [shape: f32[1,32], index: 5, kind: input, shape index: {}]   ;;  %s1410_s6 = inlined_call_operand.vmem [shape: bf16[32,32], index: 6, kind: input, shape index: {}]   ;;  %s1411_s7 = inlined_call_operand.vmem [shape: f32[1,32], index: 7, kind: input, shape index: {}]   ;;  %s1412_s8 = inlined_call_operand.vmem [shape: bf16[32,32], index: 8, kind: input, shape index: {}]   ;;  %s1413_s9 = inlined_call_operand.vmem [shape: f32[1,32], index: 9, kind: input, shape index: {}]   ;;  %s1414_s10 = inlined_call_operand.vmem [shape: bf16[32,64], index: 10, kind: input, shape index: {}]   ;;  %s1415_s11 = inlined_call_operand.vmem [shape: f32[1,64], index: 11, kind: input, shape index: {}]   ;;  %s1416_s12 = inlined_call_operand.vmem [shape: bf16[64,32], index: 12, kind: input, shape index: {}]   ;;  %s1417_s13 = inlined_call_operand.vmem [shape: f32[1,32], index: 13, kind: input, shape index: {}]   ;;  %s1418_s14 = inlined_call_operand.vmem [shape: bf16[2,8,32], index: 14, kind: output, shape index: {}]  }
   0x1 LB: > { %s1045_s30 = sadd.s32 4294967295, %s1198_s29   ;;  %p1049_p0 = scmp.ge.s32.totalorder %s1198_s29, 1  ;;  %s1198_s29 = sphi %s1278_s29, %s24_s29  }
   0x2   : > { %p411_p1 = scmp.lt.s32.totalorder %s1198_s29, 3 }
   0x4   : > { %p412_p2 = pnand %p1049_p0, %p411_p1 }
   0x5   : > { %v469_v0 = vld [vmem:[%s1406_s2] sm:$0x3] (!%p412_p2)  ;;  %vm481_vm0 = vcmask (!%p412_p2), 1041408   ;;  %p455_p3 = scmp.lt.s32.totalorder (!%p412_p2), %s1045_s30, 1  ;;  %v1200_v1 = vmov (!%p412_p2), 0.0   ;;  %vm1201_vm1 = vmmov (!%p412_p2), 0  }
   0x6   : > { %415 = sbr.rel (%p412_p2) target bundleno = 1651 (0x673), region = 76  ;;  %1103 = vmatprep.subr.bf16.mxu0 (!%p412_p2), %v1200_v1  ;;  %v483_v2 = vsel (!%p412_p2), %vm481_vm0, %v469_v0, 0  ;;  %1105 = vmatprep.mubr.msk.bf16.mxu0 (!%p412_p2), %vm1201_vm1, %v1200_v1  ;;  %v1177_v3 = vld [vmem:[%s1412_s8] sm:$0xff] (!%p412_p2)   ;;  %vm477_vm2 = vcmask (!%p412_p2), 31744   ;;  %v1178_v7 = vld [vmem:[%s1408_s4 + $0x8] sm:$0xff] (!%p412_p2)   ;;  %vm549_vm3 = vcmask (!%p412_p2), 261120  }
   0x7   : > { %1104 = vmatpush3.bf16.msra.mxu0 (!%p412_p2), %v483_v2  ;;  %1125 = vmatprep.subr.bf16.mxu1 (!%p412_p2), %v1200_v1  ;;  %v1176_v4 = vld [vmem:[%s1408_s4] sm:$0xff] (!%p412_p2)   ;;  %v1179_v8 = vld [vmem:[%s1412_s8 + $0x8] sm:$0xff] (!%p412_p2)   ;;  %vm790_vm4 = vcmask (!%p412_p2), 1043456   ;;  %v1202_v42 = vmov (!%p412_p2), 0   ;;  %vm773_vm7 = vcmask (!%p412_p2), 64512   ;;  %vm936_vm8 = vcmask (!%p412_p2), 523264  }
   0x8   : > { %1109 = vmatprep.subr.bf16.mxu0 (!%p412_p2), %v1200_v1  ;;  %1129 = vmatprep.mubr.msk.bf16.mxu1 (!%p412_p2), %vm1201_vm1, %v1200_v1  ;;  %v1052_v9 = vld [vmem:[%s1407_s3] ss:$0 sm:$0xff] (!%p412_p2)  ;;  %v1181_v17 = vld [vmem:[%s1410_s6 + $0x8] sm:$0xff] (!%p412_p2)   ;;  %vm990_vm9 = vcmask (!%p412_p2), 257024  }
   0x9   : > { %1126 = vmatpush3.bf16.msra.mxu1 (!%p412_p2), %v1177_v3  ;;  %v1180_v14 = vld [vmem:[%s1410_s6] sm:$0xff] (!%p412_p2)   ;;  %v1183_v62 = vld [vmem:[%s1414_s10 + $0x8] sm:$0xff] (!%p412_p2)  }
   0xa   : > { %1127 = vmatprep.subr.bf16.mxu1 (!%p412_p2), %v1200_v1  ;;  %v1062_v18 = vld [vmem:[%s1413_s9] ss:$0 sm:$0xff] (!%p412_p2)  ;;  %v1185_v0 = vld [vmem:[%s1416_s12 + $0x8] sm:$0xff] (!%p412_p2)  }
   0xb   : > { %v1058_v30 = vld [vmem:[%s1411_s7] ss:$0 sm:$0xff] (!%p412_p2) }
   0xc   : > { %v1054_v37 = vld [vmem:[%s1409_s5] ss:$0 sm:$0xff] (!%p412_p2) }
   0xd   : > { %s1420_s30 = smov (!%p455_p3, %s1045_s30), 1  ;;  %1128 = vmatpush3.bf16.msra.mxu1 %v1179_v8  ;;  %v467_v41 = vld [vmem:[%s1405_s1] sm:$0xf]  ;;  %v1186_v8 = vld [vmem:[%s1416_s12 + $0x10] sm:$0xff]  }
   0xe   : > { %s1050_s19 = sshll.u32 %s1420_s30, 3  ;;  %1139 = vmatprep.subr.bf16.mxu1 %v1200_v1  ;;  %vm768_vm5 = vcmp.gt.bf16.partialorder %v467_v41, 0  ;;  %v1182_v57 = vld [vmem:[%s1414_s10] sm:$0xff]   ;;  %s1051_s17 = sshll.u32 %s1420_s30, 2 }
   0xf   : > { %s458_s24 = scalar_lea.vmem %s1404_s0, %s1050_s19  ;;  %v769_v43 = vsel %vm768_vm5, 65537, %v1202_v42  ;;  %v1184_v63 = vld [vmem:[%s1416_s12] sm:$0xff]   ;;  %s462_s20 = scalar_lea.vmem %s1418_s14, %s1051_s17 }
  0x10   : > { %v466_v5 = vld [vmem:[%s458_s24] sm:$0xff]  ;;  %v770_v44 = vunpack.c.l.b16 %v769_v43 }
  0x11   : > { %v468_v6 = vpack.c.bf16 %v466_v5, %v466_v5 }
  0x12   : > { %vm771_vm6 = vcmp.ne.s32.totalorder %v770_v44, 0 }
  0x13   : > { %1106 = vmatmul.mubr.msk.bf16.vlgmr.msra.gmra.mrb[0].mxu0 %vm477_vm2, %v468_v6 }
  0x14   : > { %1110 = vmatpush3.bf16.msra.mxu0 %v1176_v4  ;;  %1113 = vmatprep.mubr.msk.bf16.mxu0 %vm1201_vm1, %v1200_v1 }
  0x15   : > { %1111 = vmatprep.subr.bf16.mxu0 %v1200_v1 }
  0x18   : > { %1112 = vmatpush3.bf16.msra.mxu0 %v1178_v7 }
  0x19   : > { %1117 = vmatprep.subr.bf16.mxu0 %v1200_v1 }
  0xe6   : > { %v519_v10 = vpop.f32.mrb[0].mxu0 }
  0xe7   : > { %v1323_v11 = vadd.f32 %v1052_v9, %v519_v10  ;;  %v1107_v12 = vpop.f32.mrb[1].mxu0  ;;  %v1187_v9 = vld [vmem:[%s1416_s12 + $0x18] sm:$0xff]   ;;  %v1068_v10 = vld [vmem:[%s1415_s11] ss:$0 sm:$0xff] }
  0xe8   : > { %v522_v13 = vpop.f32.mrb[2].mxu0 }
  0xe9   : > { %v525_v15 = vpack.c.bf16 %v1323_v11, %v1323_v11  ;;  %v1108_v16 = vpop.f32.mrb[3].mxu0 }
  0xeb   : > { %1114 = vmatmul.mubr.msk.bf16.vlgmr.msra.gmra.mrb[4].mxu0 %vm549_vm3, %v525_v15  ;;  %1130 = vmatmul.mubr.msk.bf16.vlgmr.msra.gmra.mrb[0].mxu1 %vm549_vm3, %v525_v15 }
  0xec   : > { %1118 = vmatpush3.bf16.msra.mxu0 %v1180_v14  ;;  %1121 = vmatprep.mubr.msk.bf16.mxu0 %vm1201_vm1, %v1200_v1 }
  0xed   : > { %1119 = vmatprep.subr.bf16.mxu0 %v1200_v1  ;;  %1141 = vmatprep.mubr.msk.bf16.mxu1 %vm1201_vm1, %v1200_v1 }
  0xf0   : > { %1120 = vmatpush3.bf16.msra.mxu0 %v1181_v17 }
  0xf1   : > { %1133 = vmatprep.subr.bf16.mxu0 %v1200_v1 }
  0xf3   : > { %1122 = vmatmul.mubr.msk.bf16.vlgmr.msra.gmra.mrb[8].mxu0 %vm549_vm3, %v525_v15 }
  0xf4   : > { %1135 = vmatprep.mubr.msk.bf16.mxu0 %vm1201_vm1, %v1200_v1 }
 0x1be   : > { %v587_v19 = vpop.f32.mrb[4].mxu0  ;;  %v713_v20 = vpop.f32.mrb[0].mxu1 }
 0x1bf   : > { %v714_v21 = vadd.f32 %v1062_v18, %v713_v20  ;;  %v1115_v22 = vpop.f32.mrb[5].mxu0  ;;  %v1131_v23 = vpop.f32.mrb[1].mxu1  ;;  %v588_v39 = vadd.f32 %v1054_v37, %v587_v19 }
 0x1c0   : > { %v590_v24 = vpop.f32.mrb[6].mxu0  ;;  %v716_v25 = vpop.f32.mrb[2].mxu1 }
 0x1c1   : > { %v786_v26 = vpack.c.bf16 %v714_v21, %v714_v21  ;;  %v1116_v27 = vpop.f32.mrb[7].mxu0  ;;  %v1132_v28 = vpop.f32.mrb[3].mxu1  ;;  %v719_v40 = vpack.c.bf16 %v588_v39, %v588_v39 }
 0x1c3   : > { %v792_v29 = vsel %vm790_vm4, %v786_v26, 0 }
 0x1c4   : > { %1140 = vmatpush3.bf16.msra.mxu1 %v792_v29 }
 0x1c5   : > { %1153 = vmatprep.subr.bf16.mxu1 %v1200_v1 }
 0x1c6   : > { %v650_v31 = vpop.f32.mrb[8].mxu0 }
 0x1c7   : > { %v651_v32 = vadd.f32 %v1058_v30, %v650_v31  ;;  %v1123_v33 = vpop.f32.mrb[9].mxu0 }
 0x1c8   : > { %v653_v34 = vpop.f32.mrb[10].mxu0 }
 0x1c9   : > { %v720_v35 = vpack.c.bf16 %v651_v32, %v651_v32  ;;  %v1124_v36 = vpop.f32.mrb[11].mxu0 }
 0x1cb   : > { %v725_v38 = vsel %vm549_vm3, %v720_v35, 0 }
 0x1cc   : > { %1134 = vmatpush3.bf16.xpose.msra.mxu0 %v725_v38 }
 0x1cd   : > { %1145 = vmatprep.subr.bf16.mxu0 %v1200_v1 }
 0x1d3   : > { %1136 = vmatmul.mubr.msk.bf16.vlgmr.msra.gmra.mrb[12].mxu0 %vm549_vm3, %v719_v40 }
 0x1d4   : > { %1149 = vmatprep.mubr.msk.bf16.mxu0 %vm1201_vm1, %v1200_v1  ;;  %1146 = vmatpush3.bf16.msra.mxu0 %v1182_v57 }
 0x1d5   : > { %1147 = vmatprep.subr.bf16.mxu0 %v1200_v1 }
 0x1d8   : > { %1148 = vmatpush3.bf16.msra.mxu0 %v1183_v62 }
 0x2a6   : > { %v761_v45 = vpop.f32.mrb[12].mxu0 }
 0x2a7   : > { %v767_v46 = vmul.f32 0.17677669, %v761_v45  ;;  %v1137_v47 = vpop.f32.mrb[13].mxu0 }
 0x2a8   : > { %v764_v48 = vpop.f32.mrb[14].mxu0 }
 0x2a9   : > { %v1138_v49 = vpop.f32.mrb[15].mxu0  ;;  %v772_v50 = vsel %vm771_vm6, %v767_v46, -9e+15 }
 0x2aa   : > { %v774_v51 = vsel %vm773_vm7, %v772_v50, -inf }
 0x2ab   : > { %775 = vmax.xlane.f32.xlu0 %v774_v51 }
 0x338   : > { %v776_v52 = vpop.xlane.xlu0 %775 }
 0x339   : > { %v777_v53 = vsub.f32 %v772_v50, %v776_v52 }
 0x33b   : > { %v778_v54 = vmul.f32 1.442695, %v777_v53 }
 0x33d   : > { %1188 = vpow2.f32 %v778_v54 }
 0x347   : > { %v1189_v55 = vpop.eup %1188 }
 0x348   : > { %v780_v56 = vsel %vm773_vm7, %v1189_v55, 0.0 }
 0x349   : > { %781 = vadd.xlane.f32.xlu0 %v780_v56 }
 0x3d6   : > { %v782_v58 = vpop.xlane.xlu0 %781 }
 0x3d7   : > { %1190 = vrcp.f32 %v782_v58 }
 0x3e1   : > { %v1191_v59 = vpop.eup %1190 }
 0x3e2   : > { %v784_v60 = vmul.f32 %v1191_v59, %v1189_v55 }
 0x3e4   : > { %v785_v61 = vpack.c.bf16 %v784_v60, %v784_v60 }
 0x3e6   : > { %1142 = vmatmul.mubr.msk.bf16.vlgmr.msra.gmra.mrb[4].mxu1 %vm773_vm7, %v785_v61 }
 0x3e7   : > { %1161 = vmatprep.mubr.msk.bf16.mxu1 %vm1201_vm1, %v1200_v1  ;;  %1154 = vmatpush3.bf16.msra.mxu1 %v1184_v63 }
 0x3e8   : > { %1155 = vmatprep.subr.bf16.mxu1 %v1200_v1 }
 0x3eb   : > { %1156 = vmatpush3.bf16.msra.mxu1 %v1185_v0 }
 0x3ec   : > { %1157 = vmatprep.subr.bf16.mxu1 %v1200_v1 }
 0x3ef   : > { %1158 = vmatpush3.bf16.msra.mxu1 %v1186_v8 }
 0x3f0   : > { %1159 = vmatprep.subr.bf16.mxu1 %v1200_v1  ;;  %v1077_v1 = vld [vmem:[%s1417_s13] ss:$0 sm:$0xff] }
 0x3f3   : > { %1160 = vmatpush3.bf16.msra.mxu1 %v1187_v9 }
 0x4b9   : > { %v828_v2 = vpop.f32.mrb[4].mxu1 }
 0x4ba   : > { %v834_v3 = vadd.f32 %v828_v2, %v1323_v11  ;;  %v1143_v4 = vpop.f32.mrb[5].mxu1 }
 0x4bb   : > { %v831_v5 = vpop.f32.mrb[6].mxu1 }
 0x4bc   : > { %v835_v6 = vpack.c.bf16 %v834_v3, %v834_v3  ;;  %v1144_v7 = vpop.f32.mrb[7].mxu1 }
 0x4be   : > { %1150 = vmatmul.mubr.msk.bf16.vlgmr.msra.gmra.mrb[16].mxu0 %vm549_vm3, %v835_v6 }
 0x591   : > { %v896_v11 = vpop.f32.mrb[16].mxu0 }
 0x592   : > { %v897_v12 = vadd.f32 %v1068_v10, %v896_v11  ;;  %v1151_v13 = vpop.f32.mrb[17].mxu0 }
 0x593   : > { %v899_v14 = vpop.f32.mrb[18].mxu0 }
 0x594   : > { %v902_v15 = vmax.f32 %v897_v12, 0.0  ;;  %v1152_v16 = vpop.f32.mrb[19].mxu0 }
 0x596   : > { %v903_v17 = vpack.c.bf16 %v902_v15, %v902_v15 }
 0x598   : > { %1162 = vmatmul.mubr.msk.bf16.vlgmr.msra.gmra.mrb[8].mxu1 %vm936_vm8, %v903_v17 }
 0x66b   : > { %v974_v18 = vpop.f32.mrb[8].mxu1 }
 0x66c   : > { %v980_v19 = vadd.f32 %v974_v18, %v834_v3  ;;  %v1163_v20 = vpop.f32.mrb[9].mxu1 }
 0x66d   : > { %v977_v21 = vpop.f32.mrb[10].mxu1 }
 0x66e   : > { %v988_v22 = vadd.f32 %v1077_v1, %v980_v19  ;;  %v1164_v23 = vpop.f32.mrb[11].mxu1 }
 0x670   : > { %v989_v24 = vpack.c.bf16 %v988_v22, %v988_v22 }
 0x672   : > { %991 = vst.msk [vmem:[%s462_s20] sm:$0xf] %vm990_vm9, %v989_v24 }
 0x673 PF: > { %s24_s29 = sadd.s32 1, %s1198_s29  }
 0x674   : > { %p21_p4 = scmp.ge.s32.totalorder %s24_s29, 4  }
 0x676   :  { %23 = sbr.rel (!%p21_p4) target bundleno = 1 (0x1), region = 106 }

// kernel: gnngen_forward.3
= control target key start
LH: loop header
LB: loop body
LE: loop exit
PB: predicated region body
PF: predicated region fallthrough
CT: control target
= control target key end

     0   :  { %13 = vsyncpa [#allocation4], 0  ;;  %s3286_s0 = inlined_call_operand.vmem [shape: bf16[2,8,32], index: 0, kind: input, shape index: {}, may-alias: {0,1}]   ;;  %s3287_s1 = inlined_call_operand.vmem [shape: bf16[2,8,32], index: 1, kind: input, shape index: {}, may-alias: {0,1}]   ;;  %s3288_s2 = inlined_call_operand.vmem [shape: bf16[8,8], index: 2, kind: input, shape index: {}]   ;;  %s3289_s3 = inlined_call_operand.vmem [shape: bf16[32,128], index: 3, kind: input, shape index: {}]   ;;  %s3290_s4 = inlined_call_operand.vmem [shape: bf16[128,32], index: 4, kind: input, shape index: {}]   ;;  %s3291_s5 = inlined_call_operand.vmem [shape: f32[1,128], index: 5, kind: input, shape index: {}]   ;;  %s3292_s6 = inlined_call_operand.vmem [shape: bf16[4,128], index: 6, kind: input, shape index: {}]   ;;  %s3293_s7 = inlined_call_operand.vmem [shape: f32[4,1], index: 7, kind: input, shape index: {}]   ;;  %s3294_s8 = inlined_call_operand.hbm [shape: f32[2,4,8,8], index: 8, kind: output, shape index: {}]  }
   0x1   :  { %15 = vsyncpa [#allocation4 + $0x1], 0  ;;  %s2578_s27 = smov 0   ;;  %s2580_s28 = smov 0  }
   0x2   :  { %s2582_s29 = smov 0   ;;  %s2584_s30 = smov 0  }
   0x3   :  { %s2586_s9 = smov 0   ;;  %s2588_s10 = smov 0  }
   0x4 LB: > { %s1999_s11 = sadd.s32 4294967295, %s2517_s10   ;;  %s2000_s12 = sadd.s32 4294967294, %s2517_s10   ;;  %s2517_s10 = sphi %s2588_s10, %s21_s10   ;;  %s2513_s9 = sphi %s2586_s9, %s3301_s9   ;;  %s2509_s30 = sphi %s2584_s30, %s3300_s30   ;;  %s2505_s29 = sphi %s2582_s29, %s3299_s29   ;;  %s2501_s28 = sphi %s2580_s28, %s3298_s28   ;;  %s2497_s27 = sphi %s2578_s27, %s3297_s27  }
   0x5   : > { %s40_s13 = sadd.s32 1, %s2513_s9  ;;  %s240_s14 = sadd.s32 1, %s2505_s29 }
   0x6   : > { %p42_p0 = scmp.ge.s32.totalorder %s40_s13, 2  ;;  %p250_p1 = scmp.ne.s32.totalorder %s2505_s29, %s2501_s28 }
   0x7   : > { %p251_p2 = scmp.eq.s32.totalorder %s1999_s11, 1  ;;  %p256_p3 = scmp.ne.s32.totalorder %s2501_s28, %s2497_s27 }
   0x8   : > { %s3303_s13 = smov (%p42_p0, %s40_s13), 0  ;;  %p257_p5 = scmp.eq.s32.totalorder %s2000_s12, 1 }
   0x9   : > { %p2618_p4 = por %p251_p2, %p250_p1  ;;  %s233_s16 = ssub.s32 %s2513_s9, %s3303_s13 }
   0xa   : > { %p2004_p6 = scmp.ge.s32.totalorder %s2517_s10, 1  ;;  %p238_p7 = scmp.eq.s32.totalorder %s233_s16, 0 }
   0xb   : > { %p2625_p8 = por %p257_p5, %p256_p3  ;;  %p320_p9 = scmp.lt.s32.totalorder %s2517_s10, 3 }
   0xc   : > { %s2631_s18 = scalar_select %p238_p7, %s2505_s29, %s240_s14  }
   0xd   : > { %p321_p10 = pnand %p2004_p6, %p320_p9 }
   0xe   : > { %v2429_v0 = vld [vmem:[%s3289_s3] sm:$0xff] (!%p321_p10)   ;;  %v2519_v1 = vmov (!%p321_p10), 0.0   ;;  %v2430_v2 = vld [vmem:[%s3289_s3 + $0x8] sm:$0xff] (!%p321_p10)   ;;  %vm2520_vm0 = vmmov (!%p321_p10), 0   ;;  %p370_p11 = scmp.lt.s32.totalorder (!%p321_p10), %s2509_s30, 1  ;;  %vm420_vm1 = vcmask (!%p321_p10), 261120  }
   0xf   : > { %324 = sbr.rel (%p321_p10) target bundleno = 994 (0x3e2), region = 52  ;;  %2118 = vmatprep.subr.bf16.mxu0 (!%p321_p10), %v2519_v1  ;;  %2122 = vmatprep.mubr.msk.bf16.mxu0 (!%p321_p10), %vm2520_vm0, %v2519_v1  ;;  %v2431_v4 = vld [vmem:[%s3290_s4] sm:$0xff] (!%p321_p10)   ;;  %v2432_v7 = vld [vmem:[%s3290_s4 + $0x8] sm:$0xff] (!%p321_p10)   ;;  %v2433_v8 = vld [vmem:[%s3290_s4 + $0x10] sm:$0xff] (!%p321_p10)   ;;  %v2521_v18 = vmov (!%p321_p10), 1   ;;  %v2522_v21 = vmov (!%p321_p10), 0  }
  0x10   : > { %2119 = vmatpush3.bf16.msra.mxu0 (!%p321_p10), %v2429_v0  ;;  %2128 = vmatprep.mubr.msk.bf16.mxu1 (!%p321_p10), %vm420_vm1, %v2431_v4  ;;  %v2434_v9 = vld [vmem:[%s3290_s4 + $0x18] sm:$0xff] (!%p321_p10)   ;;  %v2435_v10 = vld [vmem:[%s3290_s4 + $0x20] sm:$0xff] (!%p321_p10)   ;;  %v2436_v11 = vld [vmem:[%s3290_s4 + $0x28] sm:$0xff] (!%p321_p10)   ;;  %v2523_v32 = vmov (!%p321_p10), 2   ;;  %v2524_v34 = vmov (!%p321_p10), 3   ;;  %v2525_v55 = vmov (!%p321_p10), 4  }
  0x11   : > { %2120 = vmatprep.subr.bf16.mxu0 (!%p321_p10), %v2519_v1  ;;  %v2008_v12 = vld [vmem:[%s3291_s5] ss:$0 sm:$0xff] (!%p321_p10)  ;;  %2374 = vset.pattern.permute.xlu1 (!%p321_p10), %v2521_v18  ;;  %v2437_v19 = vld [vmem:[%s3290_s4 + $0x30] sm:$0xff] (!%p321_p10)   ;;  %v2438_v20 = vld [vmem:[%s3290_s4 + $0x38] sm:$0xff] (!%p321_p10)   ;;  %v2526_v61 = vmov (!%p321_p10), 5   ;;  %vm1831_vm7 = vcmask (!%p321_p10), 1040384  }
  0x12   : > { %vm1836_vm12 = vcmask (!%p321_p10), 1041408   ;;  %vm1841_vm13 = vcmask (!%p321_p10), 1042432   ;;  %s367_s19 = sand.u32 (!%p321_p10), 1, %s2501_s28   ;;  %s2033_s21 = sshll.u32 (!%p321_p10), %s2509_s30, 9 }
  0x13   : > { %s2005_s20 = sshll.u32 (!%p321_p10), %s367_s19, 5  ;;  %s3230_s25 = scalar_lea.hbm (!%p321_p10), %s3294_s8, %s2033_s21 }
  0x14   : > { %2121 = vmatpush3.bf16.msra.mxu0 (!%p321_p10), %v2430_v2  ;;  %s369_s22 = scalar_lea.vmem (!%p321_p10), [#allocation3], %s2005_s20  ;;  %s3240_s26 = scalar_lea.sflag (!%p321_p10), [#allocation4], %s367_s19 }
  0x15   : > { %2144 = vmatprep.subr.bf16.mxu0 (!%p321_p10), %v2519_v1  ;;  %s2530_s12 = smov (!%p321_p10), [#allocation3]  }
  0x16   : > { %s371_s23 = scalar_select %p370_p11, %s2509_s30, 1 }
  0x17   : > { %s2443_s14 = sshll.u32 %s2530_s12, 4  ;;  %s2444_s14 = int_to_ptr.vmem [resolvable:$false] %s2443_s14 }
  0x18   : > { %s2006_s24 = sshll.u32 %s371_s23, 2  ;;  %s1887_s23 = sshll.u32 %s369_s22, 4  ;;  %s3232_s23 = int_to_ptr.vmem [resolvable:$true] %s1887_s23 }
  0x19   : > { %s376_s11 = scalar_lea.vmem %s3286_s0, %s2006_s24  ;;  %s383_s16 = scalar_lea.vmem %s3287_s1, %s2006_s24 }
  0x1a   : > { %v396_v3 = vld [vmem:[%s376_s11] sm:$0xf]  ;;  %s2439_s11 = scalar_lea.vmem %s3232_s23, 512  ;;  %p2446_p1 = scmp.lt.s32.totalorder %s3232_s23, %s2444_s14 }
  0x1b   : > { %2123 = vmatmul.mubr.msk.bf16.vlgmr.msra.gmra.mrb[0].mxu0 %vm420_vm1, %v396_v3  ;;  %v481_v5 = vld [vmem:[%s383_s16] sm:$0xf]  ;;  %p2440_p12 = scmp.ne.s32.totalorder %s3232_s23, %s2439_s11  ;;  %s2445_s16 = scalar_lea.vmem %s2444_s14, 1024 }
  0x1c   : > { %2160 = vmatprep.mubr.msk.bf16.mxu0 %vm2520_vm0, %v2519_v1  ;;  %2304 = vmatprep.subr.msk.bf16.mxu1 %vm420_vm1, %v481_v5  ;;  %v547_v6 = vsel %vm420_vm1, %v481_v5, 0  ;;  %v2527_v5 = vmov 7   ;;  %p2447_p2 = scmp.lt.s32.totalorder %s2445_s16, %s2439_s11 }
  0x1d   : > { %2127 = vmatpush3.bf16.xpose.msra.mxu1 %v547_v6  ;;  %v2528_v6 = vmov 6   ;;  %p2441_p13 = pnand %p2440_p12, %p2618_p4 }
  0x1e   : > { %2164 = vmatprep.subr.bf16.mxu1 %v2519_v1  ;;  %p2448_p3 = por %p2447_p2, %p2446_p1 }
  0x1f   : > { %p2442_p0 = pneg %p2441_p13 }
  0x21   : > { %p2449_p5 = pnand %p2448_p3, %p2442_p0 }
  0x24   : > { %2129 = vmatmul.mubr.msk.bf16.vlgmr.msra.gmra.mrb[0].mxu1 %vm420_vm1, %v2432_v7 }
  0x25   : > { %2132 = vmatprep.mubr.msk.bf16.mxu1 %vm420_vm1, %v2433_v8 }
  0x2c   : > { %2133 = vmatmul.mubr.msk.bf16.gmra.mrb[4].mxu1 %vm420_vm1, %v2434_v9 }
  0x2d   : > { %2136 = vmatprep.mubr.msk.bf16.mxu1 %vm420_vm1, %v2435_v10 }
  0x34   : > { %2137 = vmatmul.mubr.msk.bf16.gmra.mrb[8].mxu1 %vm420_vm1, %v2436_v11 }
  0x35   : > { %2140 = vmatprep.mubr.msk.bf16.mxu1 %vm420_vm1, %v2437_v19 }
  0x3c   : > { %2141 = vmatmul.mubr.msk.bf16.gmra.mrb[12].mxu1 %vm420_vm1, %v2438_v20  ;;  %vm1846_vm1 = vcmask 1043456  }
  0x3d   : > { %2180 = vmatprep.mubr.msk.bf16.mxu1 %vm2520_vm0, %v2519_v1 }
  0xee   : > { %v458_v13 = vpop.f32.mrb[0].mxu0 }
  0xef   : > { %v2124_v14 = vpop.f32.mrb[1].mxu0  ;;  %v459_v15 = vadd.f32 %v2008_v12, %v458_v13 }
  0xf0   : > { %v461_v16 = vpop.f32.mrb[2].mxu0 }
  0xf1   : > { %655 = vxpose.xlu0.b32.start.end [1/1] (short) %v459_v15, 128  ;;  %v2125_v17 = vpop.f32.mrb[3].mxu0 }
  0xf7   : > { %v2130_v22 = vpop.f32.mrb[0].mxu1 }
  0xf8   : > { %v583_v24 = vpop.f32.mrb[1].mxu1 }
  0xf9   : > { %v2131_v25 = vpop.f32.mrb[2].mxu1 }
  0xfa   : > { %v2697_v26 = vpack.c.bf16 %v2131_v25, %v2130_v22  ;;  %v586_v27 = vpop.f32.mrb[3].mxu1 }
  0xfb   : > { %v2699_v29 = vpack.c.bf16 %v586_v27, %v583_v24 }
  0xff   : > { %v2134_v41 = vpop.f32.mrb[4].mxu1 }
 0x100   : > { %v599_v43 = vpop.f32.mrb[5].mxu1 }
 0x101   : > { %v2135_v44 = vpop.f32.mrb[6].mxu1 }
 0x102   : > { %v2720_v45 = vpack.c.bf16 %v2135_v44, %v2134_v41  ;;  %v602_v46 = vpop.f32.mrb[7].mxu1 }
 0x103   : > { %v2724_v49 = vpack.c.bf16 %v602_v46, %v599_v43 }
 0x107   : > { %v2138_v60 = vpop.f32.mrb[8].mxu1 }
 0x108   : > { %v615_v62 = vpop.f32.mrb[9].mxu1 }
 0x109   : > { %v2139_v0 = vpop.f32.mrb[10].mxu1 }
 0x10a   : > { %v618_v2 = vpop.f32.mrb[11].mxu1  ;;  %v2759_v3 = vpack.c.bf16 %v2139_v0, %v2138_v60 }
 0x10b   : > { %v2761_v4 = vpack.c.bf16 %v618_v2, %v615_v62 }
 0x10f   : > { %v2142_v7 = vpop.f32.mrb[12].mxu1 }
 0x110   : > { %v631_v8 = vpop.f32.mrb[13].mxu1 }
 0x111   : > { %v2143_v9 = vpop.f32.mrb[14].mxu1 }
 0x112   : > { %v2792_v10 = vpack.c.bf16 %v2143_v9, %v2142_v7  ;;  %v634_v11 = vpop.f32.mrb[15].mxu1 }
 0x113   : > { %v2795_v12 = vpack.c.bf16 %v634_v11, %v631_v8 }
 0x11a   : > { %2373 = vset.pattern.permute.xlu0 %v2522_v21 }
 0x171   : > { %v671_v23 = vpop.trf.xlu0 }
 0x175   : > { %v672_v28 = vpop.trf.xlu0 }
 0x176   : > { %v2701_v30 = vpack.c.bf16 %v672_v28, %v671_v23 }
 0x178   : > { %809 = vperm.xlu1 %2374, %v2701_v30   ;;  %698 = vperm.xlu0 %2373, %v2701_v30  }
 0x179   : > { %v673_v31 = vpop.trf.xlu0 }
 0x17c   : > { %2375 = vset.pattern.permute.xlu1 %v2523_v32  ;;  %2399 = vset.pattern.permute.xlu0 %v2523_v32 }
 0x17d   : > { %906 = vperm.xlu1 %2375, %v2701_v30   ;;  %v674_v33 = vpop.trf.xlu0 }
 0x17e   : > { %v2710_v36 = vpack.c.bf16 %v674_v33, %v673_v31 }
 0x181   : > { %2376 = vset.pattern.permute.xlu1 %v2524_v34  ;;  %v675_v35 = vpop.trf.xlu0 }
 0x182   : > { %1003 = vperm.xlu1 %2376, %v2701_v30  }
 0x185   : > { %v676_v37 = vpop.trf.xlu0 }
 0x186   : > { %2377 = vset.pattern.permute.xlu1 %v2522_v21  ;;  %v2722_v47 = vpack.c.bf16 %v676_v37, %v675_v35 }
 0x187   : > { %703 = vperm.xlu1 %2377, %v2710_v36  }
 0x189   : > { %v677_v38 = vpop.trf.xlu0 }
 0x18b   : > { %2378 = vset.pattern.permute.xlu1 %v2521_v18 }
 0x18c   : > { %813 = vperm.xlu1 %2378, %v2710_v36  }
 0x18d   : > { %v678_v39 = vpop.trf.xlu0 }
 0x18e   : > { %v2738_v56 = vpack.c.bf16 %v678_v39, %v677_v38 }
 0x190   : > { %2379 = vset.pattern.permute.xlu1 %v2523_v32 }
 0x191   : > { %910 = vperm.xlu1 %2379, %v2710_v36   ;;  %v679_v40 = vpop.trf.xlu0 }
 0x195   : > { %2380 = vset.pattern.permute.xlu1 %v2524_v34  ;;  %v680_v42 = vpop.trf.xlu0 }
 0x196   : > { %1007 = vperm.xlu1 %2380, %v2710_v36   ;;  %v2740_v57 = vpack.c.bf16 %v680_v42, %v679_v40 }
 0x199   : > { %v681_v48 = vpop.trf.xlu0 }
 0x19a   : > { %2381 = vset.pattern.permute.xlu1 %v2522_v21 }
 0x19b   : > { %708 = vperm.xlu1 %2381, %v2722_v47  }
 0x19d   : > { %v682_v50 = vpop.trf.xlu0 }
 0x19e   : > { %v2755_v63 = vpack.c.bf16 %v682_v50, %v681_v48 }
 0x19f   : > { %2382 = vset.pattern.permute.xlu1 %v2521_v18 }
 0x1a0   : > { %817 = vperm.xlu1 %2382, %v2722_v47  }
 0x1a1   : > { %v683_v51 = vpop.trf.xlu0 }
 0x1a4   : > { %2383 = vset.pattern.permute.xlu1 %v2523_v32 }
 0x1a5   : > { %914 = vperm.xlu1 %2383, %v2722_v47   ;;  %v684_v52 = vpop.trf.xlu0 }
 0x1a6   : > { %v2732_v53 = vpack.c.bf16 %v684_v52, %v683_v51 }
 0x1a8   : > { %930 = vperm.xlu0 %2399, %v2732_v53  }
 0x1a9   : > { %2384 = vset.pattern.permute.xlu1 %v2524_v34  ;;  %v685_v54 = vpop.trf.xlu0 }
 0x1aa   : > { %1011 = vperm.xlu1 %2384, %v2722_v47  }
 0x1ac   : > { %2405 = vset.pattern.permute.xlu0 %v2525_v55 }
 0x1ad   : > { %1104 = vperm.xlu0 %2405, %v2710_v36   ;;  %v686_v58 = vpop.trf.xlu0 }
 0x1ae   : > { %2385 = vset.pattern.permute.xlu1 %v2522_v21  ;;  %v2746_v59 = vpack.c.bf16 %v686_v58, %v685_v54 }
 0x1af   : > { %713 = vperm.xlu1 %2385, %v2738_v56  }
 0x1b1   : > { %1116 = vperm.xlu0 %2405, %v2740_v57  }
 0x1b3   : > { %2386 = vset.pattern.permute.xlu1 %v2521_v18 }
 0x1b4   : > { %821 = vperm.xlu1 %2386, %v2738_v56  }
 0x1b5   : > { %2409 = vset.pattern.permute.xlu0 %v2524_v34 }
 0x1b6   : > { %1031 = vperm.xlu0 %2409, %v2746_v59  }
 0x1b8   : > { %2387 = vset.pattern.permute.xlu1 %v2523_v32 }
 0x1b9   : > { %918 = vperm.xlu1 %2387, %v2738_v56  }
 0x1ba   : > { %2410 = vset.pattern.permute.xlu0 %v2526_v61 }
 0x1bb   : > { %1205 = vperm.xlu0 %2410, %v2722_v47  }
 0x1bd   : > { %2388 = vset.pattern.permute.xlu1 %v2524_v34 }
 0x1be   : > { %1015 = vperm.xlu1 %2388, %v2738_v56  }
 0x1bf   : > { %1217 = vperm.xlu0 %2410, %v2755_v63  }
 0x1c2   : > { %2389 = vset.pattern.permute.xlu1 %v2522_v21 }
 0x1c3   : > { %718 = vperm.xlu1 %2389, %v2740_v57   ;;  %2414 = vset.pattern.permute.xlu0 %v2527_v5 }
 0x1c4   : > { %1391 = vperm.xlu0 %2414, %v2701_v30  }
 0x1c7   : > { %2390 = vset.pattern.permute.xlu1 %v2521_v18 }
 0x1c8   : > { %825 = vperm.xlu1 %2390, %v2740_v57   ;;  %2416 = vset.pattern.permute.xlu0 %v2525_v55 }
 0x1c9   : > { %1128 = vperm.xlu0 %2416, %v2746_v59  }
 0x1cc   : > { %2391 = vset.pattern.permute.xlu1 %v2523_v32 }
 0x1cd   : > { %922 = vperm.xlu1 %2391, %v2740_v57   ;;  %2417 = vset.pattern.permute.xlu0 %v2528_v6 }
 0x1ce   : > { %1302 = vperm.xlu0 %2417, %v2722_v47  }
 0x1d1   : > { %2392 = vset.pattern.permute.xlu1 %v2524_v34 }
 0x1d2   : > { %1019 = vperm.xlu1 %2392, %v2740_v57   ;;  %2421 = vset.pattern.permute.xlu0 %v2527_v5 }
 0x1d3   : > { %1403 = vperm.xlu0 %2421, %v2738_v56  }
 0x1d6   : > { %2393 = vset.pattern.permute.xlu1 %v2522_v21 }
 0x1d7   : > { %723 = vperm.xlu1 %2393, %v2755_v63   ;;  %2423 = vset.pattern.permute.xlu0 %v2528_v6 }
 0x1d8   : > { %1314 = vperm.xlu0 %2423, %v2755_v63  }
 0x1db   : > { %2394 = vset.pattern.permute.xlu1 %v2521_v18 }
 0x1dc   : > { %829 = vperm.xlu1 %2394, %v2755_v63   ;;  %2425 = vset.pattern.permute.xlu0 %v2527_v5 }
 0x1dd   : > { %1415 = vperm.xlu0 %2425, %v2732_v53  }
 0x1e0   : > { %2395 = vset.pattern.permute.xlu1 %v2523_v32 }
 0x1e1   : > { %926 = vperm.xlu1 %2395, %v2755_v63   ;;  %2427 = vset.pattern.permute.xlu0 %v2522_v21 }
 0x1e5   : > { %2396 = vset.pattern.permute.xlu1 %v2524_v34 }
 0x1e6   : > { %1023 = vperm.xlu1 %2396, %v2755_v63  }
 0x1ea   : > { %2397 = vset.pattern.permute.xlu1 %v2522_v21 }
 0x1eb   : > { %728 = vperm.xlu1 %2397, %v2732_v53  }
 0x1ef   : > { %2398 = vset.pattern.permute.xlu1 %v2521_v18 }
 0x1f0   : > { %833 = vperm.xlu1 %2398, %v2732_v53  }
 0x1f4   : > { %2400 = vset.pattern.permute.xlu1 %v2522_v21 }
 0x1f5   : > { %733 = vperm.xlu1 %2400, %v2746_v59  }
 0x1f7   : > { %v810_v13 = vpop.permute.xlu1 %809  ;;  %v699_v14 = vpop.permute.xlu0 %698 }
 0x1f8   : > { %v840_v15 = vadd.bf16 %v810_v13, %v2699_v29  ;;  %v736_v16 = vadd.bf16 %v699_v14, %v2699_v29 }
 0x1f9   : > { %2401 = vset.pattern.permute.xlu1 %v2521_v18 }
 0x1fa   : > { %v848_v17 = vmax.bf16 %v2522_v21, %v840_v15  ;;  %v744_v19 = vmax.bf16 %v2522_v21, %v736_v16  ;;  %837 = vperm.xlu1 %2401, %v2746_v59  }
 0x1fc   : > { %2165 = vmatpush3.bf16.msra.mxu1 %v848_v17  ;;  %v2810_v20 = vpop.permute.xlu1 %906  ;;  %2145 = vmatpush3.bf16.msra.mxu0 %v744_v19 }
 0x1fd   : > { %2146 = vmatprep.subr.bf16.mxu0 %v2519_v1  ;;  %2166 = vmatprep.subr.bf16.mxu1 %v2519_v1 }
 0x1fe   : > { %2402 = vset.pattern.permute.xlu1 %v2524_v34 }
 0x1ff   : > { %1027 = vperm.xlu1 %2402, %v2732_v53  }
 0x201   : > { %v2816_v22 = vpop.permute.xlu1 %1003 }
 0x203   : > { %2403 = vset.pattern.permute.xlu1 %v2525_v55 }
 0x204   : > { %1100 = vperm.xlu1 %2403, %v2701_v30  }
 0x206   : > { %v704_v18 = vpop.permute.xlu1 %703 }
 0x207   : > { %v737_v23 = vadd.bf16 %v704_v18, %v2697_v26  ;;  %v2923_v18 = vld [vmem:[%s3292_s6] sm:$0x3] }
 0x208   : > { %2404 = vset.pattern.permute.xlu1 %v2526_v61 }
 0x209   : > { %v745_v24 = vmax.bf16 %v2522_v21, %v737_v23  ;;  %1197 = vperm.xlu1 %2404, %v2701_v30  }
 0x20b   : > { %v814_v25 = vpop.permute.xlu1 %813  ;;  %2147 = vmatpush3.bf16.msra.mxu0 %v745_v24 }
 0x20c   : > { %v841_v27 = vadd.bf16 %v814_v25, %v2697_v26  ;;  %2148 = vmatprep.subr.bf16.mxu0 %v2519_v1 }
 0x20d   : > { %1201 = vperm.xlu1 %2404, %v2710_v36  }
 0x20e   : > { %v849_v28 = vmax.bf16 %v2522_v21, %v841_v27 }
 0x210   : > { %2167 = vmatpush3.bf16.msra.mxu1 %v849_v28  ;;  %v2828_v31 = vpop.permute.xlu1 %910 }
 0x211   : > { %2406 = vset.pattern.permute.xlu1 %v2525_v55  ;;  %2168 = vmatprep.subr.bf16.mxu1 %v2519_v1  ;;  %v938_v25 = vadd.bf16 %v2828_v31, %v2697_v26 }
 0x212   : > { %1108 = vperm.xlu1 %2406, %v2722_v47  }
 0x215   : > { %v2833_v33 = vpop.permute.xlu1 %1007 }
 0x216   : > { %1112 = vperm.xlu1 %2406, %v2738_v56  }
 0x21a   : > { %v709_v34 = vpop.permute.xlu1 %708  ;;  %2407 = vset.pattern.permute.xlu1 %v2523_v32 }
 0x21b   : > { %v738_v35 = vadd.bf16 %v709_v34, %v2724_v49  ;;  %934 = vperm.xlu1 %2407, %v2746_v59   ;;  %v946_v34 = vmax.bf16 %v2522_v21, %v938_v25 }
 0x21d   : > { %v746_v37 = vmax.bf16 %v2522_v21, %v738_v35  ;;  %v1035_v35 = vadd.bf16 %v2833_v33, %v2697_v26 }
 0x21f   : > { %v818_v38 = vpop.permute.xlu1 %817  ;;  %2408 = vset.pattern.permute.xlu1 %v2526_v61  ;;  %2149 = vmatpush3.bf16.msra.mxu0 %v746_v37  ;;  %v1043_v33 = vmax.bf16 %v2522_v21, %v1035_v35 }
 0x220   : > { %v842_v39 = vadd.bf16 %v818_v38, %v2724_v49  ;;  %1209 = vperm.xlu1 %2408, %v2738_v56   ;;  %2150 = vmatprep.subr.bf16.mxu0 %v2519_v1 }
 0x222   : > { %v850_v40 = vmax.bf16 %v2522_v21, %v842_v39 }
 0x224   : > { %2169 = vmatpush3.bf16.msra.mxu1 %v850_v40  ;;  %v2845_v32 = vpop.permute.xlu1 %914  ;;  %1213 = vperm.xlu1 %2408, %v2740_v57  }
 0x225   : > { %2170 = vmatprep.subr.bf16.mxu1 %v2519_v1  ;;  %v939_v31 = vadd.bf16 %v2845_v32, %v2724_v49 }
 0x227   : > { %v947_v37 = vmax.bf16 %v2522_v21, %v939_v31  ;;  %v931_v32 = vpop.permute.xlu0 %930 }
 0x228   : > { %2411 = vset.pattern.permute.xlu1 %v2525_v55 }
 0x229   : > { %v2850_v41 = vpop.permute.xlu1 %1011  ;;  %1120 = vperm.xlu1 %2411, %v2755_v63  }
 0x22a   : > { %v1036_v40 = vadd.bf16 %v2850_v41, %v2724_v49 }
 0x22d   : > { %1124 = vperm.xlu1 %2411, %v2732_v53  }
 0x22e   : > { %v714_v42 = vpop.permute.xlu1 %713 }
 0x22f   : > { %v739_v43 = vadd.bf16 %v714_v42, %v2720_v45 }
 0x231   : > { %v747_v44 = vmax.bf16 %v2522_v21, %v739_v43  ;;  %2412 = vset.pattern.permute.xlu1 %v2526_v61 }
 0x232   : > { %1221 = vperm.xlu1 %2412, %v2732_v53  }
 0x233   : > { %v822_v46 = vpop.permute.xlu1 %821  ;;  %2151 = vmatpush3.bf16.msra.mxu0 %v747_v44  ;;  %v1044_v44 = vmax.bf16 %v2522_v21, %v1036_v40 }
 0x234   : > { %v843_v48 = vadd.bf16 %v822_v46, %v2720_v45  ;;  %2152 = vmatprep.subr.bf16.mxu0 %v2519_v1 }
 0x236   : > { %v851_v50 = vmax.bf16 %v2522_v21, %v843_v48  ;;  %2413 = vset.pattern.permute.xlu1 %v2528_v6 }
 0x237   : > { %1294 = vperm.xlu1 %2413, %v2701_v30  }
 0x238   : > { %2171 = vmatpush3.bf16.msra.mxu1 %v851_v50  ;;  %v2863_v51 = vpop.permute.xlu1 %918 }
 0x239   : > { %2172 = vmatprep.subr.bf16.mxu1 %v2519_v1  ;;  %v940_v38 = vadd.bf16 %v2863_v51, %v2720_v45 }
 0x23b   : > { %1298 = vperm.xlu1 %2413, %v2710_v36   ;;  %v948_v42 = vmax.bf16 %v2522_v21, %v940_v38 }
 0x23d   : > { %v2867_v52 = vpop.permute.xlu1 %1015 }
 0x23e   : > { %v1037_v46 = vadd.bf16 %v2867_v52, %v2720_v45 }
 0x23f   : > { %2415 = vset.pattern.permute.xlu1 %v2527_v5 }
 0x240   : > { %1395 = vperm.xlu1 %2415, %v2710_v36   ;;  %v1045_v51 = vmax.bf16 %v2522_v21, %v1037_v46 }
 0x242   : > { %v719_v54 = vpop.permute.xlu1 %718 }
 0x243   : > { %v740_v55 = vadd.bf16 %v719_v54, %v2761_v4 }
 0x244   : > { %2418 = vset.pattern.permute.xlu1 %v2526_v61 }
 0x245   : > { %v748_v30 = vmax.bf16 %v2522_v21, %v740_v55  ;;  %1225 = vperm.xlu1 %2418, %v2746_v59  }
 0x247   : > { %v826_v58 = vpop.permute.xlu1 %825  ;;  %2153 = vmatpush3.bf16.msra.mxu0 %v748_v30  ;;  %v1105_v30 = vpop.permute.xlu0 %1104 }
 0x248   : > { %v844_v60 = vadd.bf16 %v826_v58, %v2761_v4  ;;  %2154 = vmatprep.subr.bf16.mxu0 %v2519_v1  ;;  %v943_v58 = vadd.bf16 %v931_v32, %v2795_v12 }
 0x249   : > { %2419 = vset.pattern.permute.xlu1 %v2527_v5 }
 0x24a   : > { %v852_v62 = vmax.bf16 %v2522_v21, %v844_v60  ;;  %1399 = vperm.xlu1 %2419, %v2722_v47  }
 0x24c   : > { %2173 = vmatpush3.bf16.msra.mxu1 %v852_v62  ;;  %v2880_v36 = vpop.permute.xlu1 %922 }
 0x24d   : > { %2174 = vmatprep.subr.bf16.mxu1 %v2519_v1  ;;  %v941_v43 = vadd.bf16 %v2880_v36, %v2761_v4  ;;  %v2980_v36 = vpop.permute.xlu0 %1116 }
 0x24e   : > { %2420 = vset.pattern.permute.xlu1 %v2528_v6 }
 0x24f   : > { %1306 = vperm.xlu1 %2420, %v2738_v56   ;;  %v949_v41 = vmax.bf16 %v2522_v21, %v941_v43 }
 0x251   : > { %v2885_v61 = vpop.permute.xlu1 %1019 }
 0x252   : > { %v1038_v54 = vadd.bf16 %v2885_v61, %v2761_v4 }
 0x253   : > { %1310 = vperm.xlu1 %2420, %v2740_v57  }
 0x254   : > { %v1046_v60 = vmax.bf16 %v2522_v21, %v1038_v54 }
 0x256   : > { %v724_v0 = vpop.permute.xlu1 %723 }
 0x257   : > { %v741_v2 = vadd.bf16 %v724_v0, %v2759_v3  ;;  %2422 = vset.pattern.permute.xlu1 %v2527_v5  ;;  %v951_v0 = vmax.bf16 %v2522_v21, %v943_v58 }
 0x258   : > { %1407 = vperm.xlu1 %2422, %v2740_v57   ;;  %v395_v57 = vld [vmem:[%s3293_s7] sm:$0xf] }
 0x259   : > { %v749_v47 = vmax.bf16 %v2522_v21, %v741_v2  ;;  %754 = vperm.xlu0 %2427, %v395_v57  }
 0x25b   : > { %v830_v7 = vpop.permute.xlu1 %829  ;;  %2155 = vmatpush3.bf16.msra.mxu0 %v749_v47 }
 0x25c   : > { %v845_v8 = vadd.bf16 %v830_v7, %v2759_v3  ;;  %1411 = vperm.xlu1 %2422, %v2755_v63   ;;  %2156 = vmatprep.subr.bf16.mxu0 %v2519_v1 }
 0x25d   : > { %2428 = vset.pattern.permute.xlu0 %v2527_v5 }
 0x25e   : > { %v853_v56 = vmax.bf16 %v2522_v21, %v845_v8  ;;  %v1032_v8 = vpop.permute.xlu0 %1031 }
 0x260   : > { %2175 = vmatpush3.bf16.msra.mxu1 %v853_v56  ;;  %v2896_v9 = vpop.permute.xlu1 %926  ;;  %2424 = vset.pattern.permute.xlu1 %v2528_v6 }
 0x261   : > { %1318 = vperm.xlu1 %2424, %v2732_v53   ;;  %2176 = vmatprep.subr.bf16.mxu1 %v2519_v1  ;;  %v942_v50 = vadd.bf16 %v2896_v9, %v2759_v3  ;;  %v1041_v9 = vadd.bf16 %v1032_v8, %v2792_v10 }
 0x263   : > { %v950_v52 = vmax.bf16 %v2522_v21, %v942_v50 }
 0x265   : > { %v2904_v11 = vpop.permute.xlu1 %1023  ;;  %1322 = vperm.xlu1 %2424, %v2746_v59  }
 0x266   : > { %v1039_v62 = vadd.bf16 %v2904_v11, %v2759_v3 }
 0x268   : > { %v1047_v2 = vmax.bf16 %v2522_v21, %v1039_v62 }
 0x269   : > { %2426 = vset.pattern.permute.xlu1 %v2527_v5 }
 0x26a   : > { %v729_v63 = vpop.permute.xlu1 %728  ;;  %1419 = vperm.xlu1 %2426, %v2746_v59   ;;  %v937_v59 = vadd.bf16 %v2810_v20, %v2699_v29  ;;  %v1034_v20 = vadd.bf16 %v2816_v22, %v2699_v29 }
 0x26b   : > { %v742_v53 = vadd.bf16 %v729_v63, %v2795_v12 }
 0x26c   : > { %v945_v24 = vmax.bf16 %v2522_v21, %v937_v59  ;;  %v1042_v22 = vmax.bf16 %v2522_v21, %v1034_v20  ;;  %v1206_v59 = vpop.permute.xlu0 %1205 }
 0x26d   : > { %v750_v6 = vmax.bf16 %v2522_v21, %v742_v53  ;;  %v1049_v53 = vmax.bf16 %v2522_v21, %v1041_v9 }
 0x26f   : > { %v834_v13 = vpop.permute.xlu1 %833  ;;  %2157 = vmatpush3.bf16.msra.mxu0 %v750_v6 }
 0x270   : > { %v846_v14 = vadd.bf16 %v834_v13, %v2795_v12  ;;  %2158 = vmatprep.subr.bf16.mxu0 %v2519_v1  ;;  %v1218_v40 = vpop.permute.xlu0 %1217 }
 0x271   : > { %v1233_v32 = vadd.bf16 %v1218_v40, %v2759_v3 }
 0x272   : > { %v854_v15 = vmax.bf16 %v2522_v21, %v846_v14 }
 0x274   : > { %2177 = vmatpush3.bf16.msra.mxu1 %v854_v15  ;;  %v734_v16 = vpop.permute.xlu1 %733 }
 0x275   : > { %v743_v17 = vadd.bf16 %v734_v16, %v2792_v10  ;;  %2178 = vmatprep.subr.bf16.mxu1 %v2519_v1 }
 0x277   : > { %v751_v5 = vmax.bf16 %v2522_v21, %v743_v17  ;;  %v1132_v17 = vadd.bf16 %v1105_v30, %v2697_v26 }
 0x279   : > { %v838_v19 = vpop.permute.xlu1 %837  ;;  %2159 = vmatpush3.bf16.msra.mxu0 %v751_v5  ;;  %v1140_v25 = vmax.bf16 %v2522_v21, %v1132_v17 }
 0x27a   : > { %v847_v23 = vadd.bf16 %v838_v19, %v2792_v10  ;;  %2184 = vmatprep.subr.bf16.mxu0 %v2519_v1 }
 0x27c   : > { %v855_v27 = vmax.bf16 %v2522_v21, %v847_v23  ;;  %2161 = vmatmul.mubr.bf16.vlgmr.msra.gmra.mrb[4].mxu0 %v2923_v18  ;;  %v1230_v23 = vadd.bf16 %v1206_v59, %v2724_v49 }
 0x27d   : > { %2185 = vmatpush3.bf16.msra.mxu0 %v945_v24  ;;  %2200 = vmatprep.mubr.msk.bf16.mxu0 %vm2520_vm0, %v2519_v1 }
 0x27e   : > { %2179 = vmatpush3.bf16.msra.mxu1 %v855_v27  ;;  %v1028_v28 = vpop.permute.xlu1 %1027  ;;  %2186 = vmatprep.subr.bf16.mxu0 %v2519_v1  ;;  %v1238_v27 = vmax.bf16 %v2522_v21, %v1230_v23 }
 0x27f   : > { %2204 = vmatprep.subr.bf16.mxu1 %v2519_v1  ;;  %v1040_v47 = vadd.bf16 %v1028_v28, %v2795_v12 }
 0x281   : > { %2187 = vmatpush3.bf16.msra.mxu0 %v946_v34  ;;  %2181 = vmatmul.mubr.bf16.vlgmr.msra.gmra.mrb[16].mxu1 %v2923_v18  ;;  %v1048_v56 = vmax.bf16 %v2522_v21, %v1040_v47 }
 0x282   : > { %2205 = vmatpush3.bf16.msra.mxu1 %v1042_v22  ;;  %2188 = vmatprep.subr.bf16.mxu0 %v2519_v1 }
 0x283   : > { %v2949_v39 = vpop.permute.xlu1 %1100  ;;  %2206 = vmatprep.subr.bf16.mxu1 %v2519_v1  ;;  %2220 = vmatprep.mubr.msk.bf16.mxu1 %vm2520_vm0, %v2519_v1 }
 0x284   : > { %v1131_v6 = vadd.bf16 %v2949_v39, %v2699_v29 }
 0x285   : > { %2189 = vmatpush3.bf16.msra.mxu0 %v947_v37 }
 0x286   : > { %2207 = vmatpush3.bf16.msra.mxu1 %v1043_v33  ;;  %2190 = vmatprep.subr.bf16.mxu0 %v2519_v1  ;;  %v1139_v5 = vmax.bf16 %v2522_v21, %v1131_v6  ;;  %v1135_v33 = vadd.bf16 %v2980_v36, %v2761_v4 }
 0x287   : > { %2208 = vmatprep.subr.bf16.mxu1 %v2519_v1 }
 0x288   : > { %v1198_v48 = vpop.permute.xlu1 %1197  ;;  %v1143_v46 = vmax.bf16 %v2522_v21, %v1135_v33 }
 0x289   : > { %2191 = vmatpush3.bf16.msra.mxu0 %v948_v42  ;;  %v1228_v63 = vadd.bf16 %v1198_v48, %v2699_v29  ;;  %v1241_v48 = vmax.bf16 %v2522_v21, %v1233_v32 }
 0x28a   : > { %2209 = vmatpush3.bf16.msra.mxu1 %v1044_v44  ;;  %2192 = vmatprep.subr.bf16.mxu0 %v2519_v1 }
 0x28b   : > { %2210 = vmatprep.subr.bf16.mxu1 %v2519_v1  ;;  %v1236_v15 = vmax.bf16 %v2522_v21, %v1228_v63 }
 0x28c   : > { %v1202_v55 = vpop.permute.xlu1 %1201 }
 0x28d   : > { %2193 = vmatpush3.bf16.msra.mxu0 %v949_v41  ;;  %v1229_v16 = vadd.bf16 %v1202_v55, %v2697_v26  ;;  %v1392_v41 = vpop.permute.xlu0 %1391 }
 0x28e   : > { %2211 = vmatpush3.bf16.msra.mxu1 %v1045_v51  ;;  %2194 = vmatprep.subr.bf16.mxu0 %v2519_v1 }
 0x28f   : > { %2212 = vmatprep.subr.bf16.mxu1 %v2519_v1  ;;  %v1237_v24 = vmax.bf16 %v2522_v21, %v1229_v16 }
 0x291   : > { %v1109_v61 = vpop.permute.xlu1 %1108  ;;  %2195 = vmatpush3.bf16.msra.mxu0 %v950_v52  ;;  %v1129_v30 = vpop.permute.xlu0 %1128 }
 0x292   : > { %2213 = vmatpush3.bf16.msra.mxu1 %v1046_v60  ;;  %2196 = vmatprep.subr.bf16.mxu0 %v2519_v1  ;;  %v1133_v20 = vadd.bf16 %v1109_v61, %v2724_v49  ;;  %v1138_v60 = vadd.bf16 %v1129_v30, %v2792_v10  ;;  %v2529_v30 = vmov 1966171168  }
 0x293   : > { %2214 = vmatprep.subr.bf16.mxu1 %v2519_v1 }
 0x294   : > { %v1141_v31 = vmax.bf16 %v2522_v21, %v1133_v20  ;;  %v1146_v61 = vmax.bf16 %v2522_v21, %v1138_v60 }
 0x295   : > { %v1113_v7 = vpop.permute.xlu1 %1112  ;;  %2197 = vmatpush3.bf16.msra.mxu0 %v951_v0 }
 0x296   : > { %2215 = vmatpush3.bf16.msra.mxu1 %v1047_v2  ;;  %2198 = vmatprep.subr.bf16.mxu0 %v2519_v1  ;;  %v1134_v22 = vadd.bf16 %v1113_v7, %v2720_v45  ;;  %v1303_v7 = vpop.permute.xlu0 %1302 }
 0x297   : > { %2216 = vmatprep.subr.bf16.mxu1 %v2519_v1 }
 0x298   : > { %v1142_v39 = vmax.bf16 %v2522_v21, %v1134_v22 }
 0x29a   : > { %2217 = vmatpush3.bf16.msra.mxu1 %v1048_v56  ;;  %v935_v57 = vpop.permute.xlu1 %934  ;;  %v1327_v56 = vadd.bf16 %v1303_v7, %v2724_v49 }
 0x29b   : > { %v944_v11 = vadd.bf16 %v935_v57, %v2792_v10  ;;  %2218 = vmatprep.subr.bf16.mxu1 %v2519_v1 }
 0x29d   : > { %v952_v13 = vmax.bf16 %v2522_v21, %v944_v11  ;;  %v1422_v11 = vadd.bf16 %v1392_v41, %v2699_v29 }
 0x29e   : > { %2219 = vmatpush3.bf16.msra.mxu1 %v1049_v53  ;;  %v1335_v53 = vmax.bf16 %v2522_v21, %v1327_v56 }
 0x29f   : > { %v1210_v14 = vpop.permute.xlu1 %1209  ;;  %2199 = vmatpush3.bf16.msra.mxu0 %v952_v13  ;;  %2244 = vmatprep.subr.bf16.mxu1 %v2519_v1  ;;  %v1430_v13 = vmax.bf16 %v2522_v21, %v1422_v11 }
 0x2a0   : > { %2224 = vmatprep.subr.bf16.mxu0 %v2519_v1  ;;  %v1231_v28 = vadd.bf16 %v1210_v14, %v2720_v45 }
 0x2a1   : > { %2221 = vmatmul.mubr.bf16.vlgmr.msra.gmra.mrb[20].mxu1 %v2923_v18 }
 0x2a2   : > { %2201 = vmatmul.mubr.bf16.vlgmr.msra.gmra.mrb[8].mxu0 %v2923_v18  ;;  %2245 = vmatpush3.bf16.msra.mxu1 %v1236_v15  ;;  %v1239_v35 = vmax.bf16 %v2522_v21, %v1231_v28  ;;  %v1404_v15 = vpop.permute.xlu0 %1403 }
 0x2a3   : > { %v1214_v19 = vpop.permute.xlu1 %1213  ;;  %2225 = vmatpush3.bf16.msra.mxu0 %v1139_v5  ;;  %2246 = vmatprep.subr.bf16.mxu1 %v2519_v1  ;;  %v1425_v23 = vadd.bf16 %v1404_v15, %v2720_v45 }
 0x2a4   : > { %2226 = vmatprep.subr.bf16.mxu0 %v2519_v1  ;;  %2240 = vmatprep.mubr.msk.bf16.mxu0 %vm2520_vm0, %v2519_v1  ;;  %v1232_v37 = vadd.bf16 %v1214_v19, %v2761_v4 }
 0x2a5   : > { %2260 = vmatprep.mubr.msk.bf16.mxu1 %vm2520_vm0, %v2519_v1 }
 0x2a6   : > { %2247 = vmatpush3.bf16.msra.mxu1 %v1237_v24  ;;  %v1240_v42 = vmax.bf16 %v2522_v21, %v1232_v37  ;;  %v1315_v5 = vpop.permute.xlu0 %1314 }
 0x2a7   : > { %2227 = vmatpush3.bf16.msra.mxu0 %v1140_v25  ;;  %2248 = vmatprep.subr.bf16.mxu1 %v2519_v1 }
 0x2a8   : > { %v1121_v34 = vpop.permute.xlu1 %1120  ;;  %2228 = vmatprep.subr.bf16.mxu0 %v2519_v1 }
 0x2a9   : > { %v1136_v43 = vadd.bf16 %v1121_v34, %v2759_v3 }
 0x2aa   : > { %2249 = vmatpush3.bf16.msra.mxu1 %v1238_v27  ;;  %v1433_v27 = vmax.bf16 %v2522_v21, %v1425_v23 }
 0x2ab   : > { %2229 = vmatpush3.bf16.msra.mxu0 %v1141_v31  ;;  %2250 = vmatprep.subr.bf16.mxu1 %v2519_v1  ;;  %v1144_v51 = vmax.bf16 %v2522_v21, %v1136_v43 }
 0x2ac   : > { %v1125_v38 = vpop.permute.xlu1 %1124  ;;  %2230 = vmatprep.subr.bf16.mxu0 %v2519_v1 }
 0x2ad   : > { %v1137_v54 = vadd.bf16 %v1125_v38, %v2795_v12 }
 0x2ae   : > { %2251 = vmatpush3.bf16.msra.mxu1 %v1239_v35  ;;  %v1416_v35 = vpop.permute.xlu0 %1415 }
 0x2af   : > { %2231 = vmatpush3.bf16.msra.mxu0 %v1142_v39  ;;  %2252 = vmatprep.subr.bf16.mxu1 %v2519_v1  ;;  %v1145_v58 = vmax.bf16 %v2522_v21, %v1137_v54 }
 0x2b0   : > { %2232 = vmatprep.subr.bf16.mxu0 %v2519_v1 }
 0x2b1   : > { %v1222_v44 = vpop.permute.xlu1 %1221 }
 0x2b2   : > { %2253 = vmatpush3.bf16.msra.mxu1 %v1240_v42  ;;  %v1234_v50 = vadd.bf16 %v1222_v44, %v2795_v12 }
 0x2b3   : > { %2233 = vmatpush3.bf16.msra.mxu0 %v1143_v46  ;;  %2254 = vmatprep.subr.bf16.mxu1 %v2519_v1 }
 0x2b4   : > { %2234 = vmatprep.subr.bf16.mxu0 %v2519_v1  ;;  %v1242_v52 = vmax.bf16 %v2522_v21, %v1234_v50  ;;  %v802_v50 = vlaneseq }
 0x2b6   : > { %v1295_v55 = vpop.permute.xlu1 %1294  ;;  %2255 = vmatpush3.bf16.msra.mxu1 %v1241_v48  ;;  %v695_v48 = vld [vmem:[%s3288_s2] sm:$0xf] }
 0x2b7   : > { %2235 = vmatpush3.bf16.msra.mxu0 %v1144_v51  ;;  %2256 = vmatprep.subr.bf16.mxu1 %v2519_v1  ;;  %v1325_v36 = vadd.bf16 %v1295_v55, %v2699_v29  ;;  %vm797_vm2 = vcmp.gt.bf16.partialorder %v695_v48, 0 }
 0x2b8   : > { %2236 = vmatprep.subr.bf16.mxu0 %v2519_v1 }
 0x2b9   : > { %v1333_v2 = vmax.bf16 %v2522_v21, %v1325_v36 }
 0x2ba   : > { %v1299_v62 = vpop.permute.xlu1 %1298  ;;  %2257 = vmatpush3.bf16.msra.mxu1 %v1242_v52 }
 0x2bb   : > { %2237 = vmatpush3.bf16.msra.mxu0 %v1145_v58  ;;  %2258 = vmatprep.subr.bf16.mxu1 %v2519_v1  ;;  %v1326_v47 = vadd.bf16 %v1299_v62, %v2697_v26 }
 0x2bc   : > { %2238 = vmatprep.subr.bf16.mxu0 %v2519_v1 }
 0x2bd   : > { %v1334_v9 = vmax.bf16 %v2522_v21, %v1326_v47 }
 0x2bf   : > { %v1396_v0 = vpop.permute.xlu1 %1395  ;;  %2239 = vmatpush3.bf16.msra.mxu0 %v1146_v61 }
 0x2c0   : > { %2264 = vmatprep.subr.bf16.mxu0 %v2519_v1  ;;  %v1423_v14 = vadd.bf16 %v1396_v0, %v2697_v26 }
 0x2c2   : > { %2241 = vmatmul.mubr.bf16.vlgmr.msra.gmra.mrb[12].mxu0 %v2923_v18  ;;  %v1431_v16 = vmax.bf16 %v2522_v21, %v1423_v14 }
 0x2c3   : > { %2265 = vmatpush3.bf16.msra.mxu0 %v1333_v2  ;;  %2280 = vmatprep.mubr.msk.bf16.mxu0 %vm2520_vm0, %v2519_v1 }
 0x2c4   : > { %v1226_v8 = vpop.permute.xlu1 %1225  ;;  %2266 = vmatprep.subr.bf16.mxu0 %v2519_v1 }
 0x2c5   : > { %v1235_v57 = vadd.bf16 %v1226_v8, %v2792_v10 }
 0x2c7   : > { %v1243_v63 = vmax.bf16 %v2522_v21, %v1235_v57  ;;  %2267 = vmatpush3.bf16.msra.mxu0 %v1334_v9 }
 0x2c8   : > { %2268 = vmatprep.subr.bf16.mxu0 %v2519_v1 }
 0x2c9   : > { %v1400_v6 = vpop.permute.xlu1 %1399  ;;  %2259 = vmatpush3.bf16.msra.mxu1 %v1243_v63 }
 0x2ca   : > { %2284 = vmatprep.subr.bf16.mxu1 %v2519_v1  ;;  %v1424_v17 = vadd.bf16 %v1400_v6, %v2724_v49  ;;  %v1330_v49 = vadd.bf16 %v1315_v5, %v2759_v3 }
 0x2cb   : > { %2269 = vmatpush3.bf16.msra.mxu0 %v1335_v53 }
 0x2cc   : > { %2261 = vmatmul.mubr.bf16.vlgmr.msra.gmra.mrb[24].mxu1 %v2923_v18  ;;  %2270 = vmatprep.subr.bf16.mxu0 %v2519_v1  ;;  %v1432_v24 = vmax.bf16 %v2522_v21, %v1424_v17  ;;  %v1338_v34 = vmax.bf16 %v2522_v21, %v1330_v49 }
 0x2cd   : > { %2285 = vmatpush3.bf16.msra.mxu1 %v1430_v13  ;;  %2300 = vmatprep.mubr.msk.bf16.mxu1 %vm2520_vm0, %v2519_v1 }
 0x2ce   : > { %v1307_v29 = vpop.permute.xlu1 %1306  ;;  %2286 = vmatprep.subr.bf16.mxu1 %v2519_v1 }
 0x2cf   : > { %v1328_v59 = vadd.bf16 %v1307_v29, %v2720_v45 }
 0x2d1   : > { %v1336_v26 = vmax.bf16 %v2522_v21, %v1328_v59  ;;  %2287 = vmatpush3.bf16.msra.mxu1 %v1431_v16 }
 0x2d2   : > { %v1311_v19 = vpop.permute.xlu1 %1310  ;;  %2288 = vmatprep.subr.bf16.mxu1 %v2519_v1 }
 0x2d3   : > { %v1329_v25 = vadd.bf16 %v1311_v19, %v2761_v4  ;;  %2271 = vmatpush3.bf16.msra.mxu0 %v1336_v26 }
 0x2d4   : > { %2272 = vmatprep.subr.bf16.mxu0 %v2519_v1 }
 0x2d5   : > { %v1337_v20 = vmax.bf16 %v2522_v21, %v1329_v25  ;;  %2289 = vmatpush3.bf16.msra.mxu1 %v1432_v24 }
 0x2d6   : > { %2290 = vmatprep.subr.bf16.mxu1 %v2519_v1 }
 0x2d7   : > { %v1408_v28 = vpop.permute.xlu1 %1407  ;;  %2273 = vmatpush3.bf16.msra.mxu0 %v1337_v20 }
 0x2d8   : > { %v1426_v45 = vadd.bf16 %v1408_v28, %v2761_v4  ;;  %2274 = vmatprep.subr.bf16.mxu0 %v2519_v1  ;;  %v1428_v4 = vadd.bf16 %v1416_v35, %v2795_v12  ;;  %v3120_v36 = vpop.permute.xlu0 %754 }
 0x2d9   : > { %2291 = vmatpush3.bf16.msra.mxu1 %v1433_v27 }
 0x2da   : > { %v1434_v31 = vmax.bf16 %v2522_v21, %v1426_v45  ;;  %2292 = vmatprep.subr.bf16.mxu1 %v2519_v1  ;;  %v1436_v40 = vmax.bf16 %v2522_v21, %v1428_v4 }
 0x2db   : > { %v1412_v22 = vpop.permute.xlu1 %1411  ;;  %2275 = vmatpush3.bf16.msra.mxu0 %v1338_v34 }
 0x2dc   : > { %v1427_v37 = vadd.bf16 %v1412_v22, %v2759_v3  ;;  %2276 = vmatprep.subr.bf16.mxu0 %v2519_v1 }
 0x2dd   : > { %2293 = vmatpush3.bf16.msra.mxu1 %v1434_v31 }
 0x2de   : > { %v1435_v38 = vmax.bf16 %v2522_v21, %v1427_v37  ;;  %2294 = vmatprep.subr.bf16.mxu1 %v2519_v1 }
 0x2e0   : > { %v1319_v39 = vpop.permute.xlu1 %1318 }
 0x2e1   : > { %v1331_v33 = vadd.bf16 %v1319_v39, %v2795_v12  ;;  %2295 = vmatpush3.bf16.msra.mxu1 %v1435_v38 }
 0x2e2   : > { %2296 = vmatprep.subr.bf16.mxu1 %v2519_v1 }
 0x2e3   : > { %v1339_v32 = vmax.bf16 %v2522_v21, %v1331_v33 }
 0x2e4   : > { %v1323_v3 = vpop.permute.xlu1 %1322 }
 0x2e5   : > { %v1332_v42 = vadd.bf16 %v1323_v3, %v2792_v10  ;;  %2277 = vmatpush3.bf16.msra.mxu0 %v1339_v32  ;;  %2297 = vmatpush3.bf16.msra.mxu1 %v1436_v40 }
 0x2e6   : > { %2278 = vmatprep.subr.bf16.mxu0 %v2519_v1  ;;  %2298 = vmatprep.subr.bf16.mxu1 %v2519_v1  ;;  %v798_v1 = vsel %vm797_vm2, 65537, %v2522_v21 }
 0x2e7   : > { %v1340_v43 = vmax.bf16 %v2522_v21, %v1332_v42  ;;  %v799_v41 = vunpack.c.l.b16 %v798_v1 }
 0x2e9   : > { %v1420_v44 = vpop.permute.xlu1 %1419  ;;  %2279 = vmatpush3.bf16.msra.mxu0 %v1340_v43  ;;  %vm800_vm3 = vcmp.ne.s32.totalorder %v799_v41, 0 }
 0x2ea   : > { %v1429_v12 = vadd.bf16 %v1420_v44, %v2792_v10  ;;  %v3112_v51 = vsel %vm800_vm3, 1, %v2522_v21  ;;  %v803_v10 = vshrl.u32 %v802_v50, 7  ;;  %vm1851_vm3 = vcmask 1044480  }
 0x2eb   : > { %v896_v54 = vrot.slane %v3112_v51, 1  ;;  %v1090_v22 = vrot.slane %v3112_v51, 3  ;;  %v993_v35 = vrot.slane %v3112_v51, 2 }
 0x2ec   : > { %v1437_v46 = vmax.bf16 %v2522_v21, %v1429_v12  ;;  %2281 = vmatmul.mubr.bf16.vlgmr.msra.gmra.mrb[16].mxu0 %v2923_v18  ;;  %v3115_v55 = vsub.s32 0, %v803_v10 }
 0x2ed   : > { %vm897_vm4 = vcmp.ne.s32.totalorder %v896_v54, 0  ;;  %vm1091_vm8 = vcmp.ne.s32.totalorder %v1090_v22, 0  ;;  %vm994_vm9 = vcmp.ne.s32.totalorder %v993_v35, 0 }
 0x2ee   : > { %2299 = vmatpush3.bf16.msra.mxu1 %v1437_v46  ;;  %v805_v52 = vrot.slane %v3112_v51, %v3115_v55  ;;  %v898_v58 = vsel %vm897_vm4, 1, %v2522_v21  ;;  %v1092_v37 = vsel %vm1091_vm8, 1, %v2522_v21  ;;  %v995_v38 = vsel %vm994_vm9, 1, %v2522_v21 }
 0x2ef   : > { %v902_v61 = vrot.slane %v898_v58, %v3115_v55  ;;  %v1096_v4 = vrot.slane %v1092_v37, %v3115_v55  ;;  %v999_v39 = vrot.slane %v995_v38, %v3115_v55  ;;  %vm1856_vm8 = vcmask 1045504  }
 0x2f0   : > { %vm806_vm5 = vcmp.eq.s32.totalorder %v805_v52, 1  ;;  %vm1861_vm9 = vcmask 1046528  }
 0x2f1   : > { %2301 = vmatmul.mubr.bf16.vlgmr.msra.gmra.mrb[28].mxu1 %v2923_v18  ;;  %v1489_v18 = vunpack.c.l.s4 %v2529_v30  ;;  %vm903_vm6 = vcmp.eq.s32.totalorder %v902_v61, 1  ;;  %vm1097_vm10 = vcmp.eq.s32.totalorder %v1096_v4, 1  ;;  %vm1000_vm11 = vcmp.eq.s32.totalorder %v999_v39, 1 }
 0x2f3   : > { %v1490_v60 = vunpack.c.0.s8 %v1489_v18 }
 0x2f5   : > { %v3124_v47 = vsub.s32 %v1490_v60, %v803_v10 }
 0x34f   : > { %v791_v62 = vpop.f32.mrb[4].mxu0 }
 0x350   : > { %v792_v0 = vadd.f32 %v791_v62, %v3120_v36  ;;  %v2162_v2 = vpop.f32.mrb[5].mxu0 }
 0x351   : > { %v794_v7 = vpop.f32.mrb[6].mxu0 }
 0x352   : > { %v807_v8 = vsel %vm806_vm5, %v792_v0, -9e+15  ;;  %v2163_v56 = vpop.f32.mrb[7].mxu0 }
 0x353   : > { %v1494_v9 = vrot.slane %v807_v8, %v3124_v47 }
 0x354   : > { %v890_v57 = vpop.f32.mrb[16].mxu1 }
 0x355   : > { %v891_v11 = vadd.f32 %v890_v57, %v3120_v36  ;;  %v1495_v63 = vcombine.high %v1494_v9, %v1494_v9  ;;  %v2182_v53 = vpop.f32.mrb[17].mxu1  ;;  %v1502_v29 = vrot.slane %v1494_v9, %v3124_v47 }
 0x356   : > { %v893_v6 = vpop.f32.mrb[18].mxu1 }
 0x357   : > { %v904_v13 = vsel %vm903_vm6, %v891_v11, -9e+15  ;;  %v2183_v14 = vpop.f32.mrb[19].mxu1  ;;  %v1509_v16 = vrot.slane %v1495_v63, %v3124_v47  ;;  %v1510_v19 = vcombine.high %v1502_v29, %v1502_v29 }
 0x358   : > { %v1523_v15 = vrot.slane %v904_v13, %v3124_v47 }
 0x359   : > { %v1511_v24 = vcombine.high %v1509_v16, %v1509_v16 }
 0x35a   : > { %v1524_v17 = vcombine.high %v1523_v15, %v1523_v15  ;;  %v1531_v59 = vrot.slane %v1523_v15, %v3124_v47 }
 0x35c   : > { %v1538_v26 = vrot.slane %v1524_v17, %v3124_v47  ;;  %v1539_v5 = vcombine.high %v1531_v59, %v1531_v59  ;;  %v1694_v23 = vrot.slane %v1531_v59, %v3115_v55 }
 0x35e   : > { %v1540_v25 = vcombine.high %v1538_v26, %v1538_v26  ;;  %v1698_v49 = vrot.slane %v1538_v26, %v3115_v55  ;;  %v1702_v20 = vrot.slane %v1539_v5, %v3115_v55  ;;  %v1832_v27 = vsel %vm1831_vm7, %v1502_v29, %v1694_v23 }
 0x35f   : > { %v1187_v26 = vrot.slane %v3112_v51, 4 }
 0x360   : > { %v1706_v28 = vrot.slane %v1540_v25, %v3115_v55  ;;  %v1833_v45 = vsel %vm1831_vm7, %v1509_v16, %v1698_v49  ;;  %v1834_v34 = vsel %vm1831_vm7, %v1510_v19, %v1702_v20  ;;  %v1284_v19 = vrot.slane %v3112_v51, 5 }
 0x361   : > { %vm1188_vm14 = vcmp.ne.s32.totalorder %v1187_v26, 0 }
 0x362   : > { %v1835_v31 = vsel %vm1831_vm7, %v1511_v24, %v1706_v28  ;;  %v1189_v5 = vsel %vm1188_vm14, 1, %v2522_v21  ;;  %vm1285_vm15 = vcmp.ne.s32.totalorder %v1284_v19, 0 }
 0x363   : > { %v1193_v23 = vrot.slane %v1189_v5, %v3115_v55  ;;  %v1286_v20 = vsel %vm1285_vm15, 1, %v2522_v21 }
 0x365   : > { %vm1194_vm0 = vcmp.eq.s32.totalorder %v1193_v23, 1 }
 0x374   : > { %v1084_v33 = vpop.f32.mrb[20].mxu1 }
 0x375   : > { %v987_v40 = vpop.f32.mrb[8].mxu0  ;;  %v1085_v32 = vadd.f32 %v1084_v33, %v3120_v36  ;;  %v2222_v3 = vpop.f32.mrb[21].mxu1 }
 0x376   : > { %v988_v42 = vadd.f32 %v987_v40, %v3120_v36  ;;  %v2202_v43 = vpop.f32.mrb[9].mxu0  ;;  %v1087_v44 = vpop.f32.mrb[22].mxu1 }
 0x377   : > { %v1098_v12 = vsel %vm1097_vm10, %v1085_v32, -9e+15  ;;  %v990_v46 = vpop.f32.mrb[10].mxu0  ;;  %v2223_v48 = vpop.f32.mrb[23].mxu1  ;;  %vm1866_vm10 = vcmask 64512  }
 0x378   : > { %v1001_v1 = vsel %vm1000_vm11, %v988_v42, -9e+15  ;;  %v1573_v41 = vrot.slane %v1098_v12, %v3124_v47  ;;  %v2203_v50 = vpop.f32.mrb[11].mxu0 }
 0x379   : > { %v1548_v10 = vrot.slane %v1001_v1, %v3124_v47 }
 0x37a   : > { %v1574_v54 = vcombine.high %v1573_v41, %v1573_v41  ;;  %v1581_v30 = vrot.slane %v1573_v41, %v3124_v47 }
 0x37b   : > { %v1549_v18 = vcombine.high %v1548_v10, %v1548_v10  ;;  %v1556_v52 = vrot.slane %v1548_v10, %v3124_v47 }
 0x37c   : > { %v1588_v58 = vrot.slane %v1574_v54, %v3124_v47  ;;  %v1589_v60 = vcombine.high %v1581_v30, %v1581_v30  ;;  %v1734_v62 = vrot.slane %v1581_v30, %v3115_v55 }
 0x37d   : > { %v1563_v61 = vrot.slane %v1549_v18, %v3124_v47  ;;  %v1564_v0 = vcombine.high %v1556_v52, %v1556_v52  ;;  %v1714_v2 = vrot.slane %v1556_v52, %v3115_v55 }
 0x37e   : > { %v1590_v7 = vcombine.high %v1588_v58, %v1588_v58  ;;  %v1738_v8 = vrot.slane %v1588_v58, %v3115_v55  ;;  %v1742_v56 = vrot.slane %v1589_v60, %v3115_v55 }
 0x37f   : > { %v1565_v9 = vcombine.high %v1563_v61, %v1563_v61  ;;  %v1718_v57 = vrot.slane %v1563_v61, %v3115_v55  ;;  %v1722_v11 = vrot.slane %v1564_v0, %v3115_v55  ;;  %v1837_v63 = vsel %vm1836_vm12, %v1832_v27, %v1714_v2 }
 0x380   : > { %v1746_v53 = vrot.slane %v1590_v7, %v3115_v55  ;;  %v1842_v6 = vsel %vm1841_vm13, %v1837_v63, %v1734_v62 }
 0x381   : > { %v1726_v13 = vrot.slane %v1565_v9, %v3115_v55  ;;  %v1838_v14 = vsel %vm1836_vm12, %v1833_v45, %v1718_v57  ;;  %v1839_v15 = vsel %vm1836_vm12, %v1834_v34, %v1722_v11  ;;  %v1381_v9 = vrot.slane %v3112_v51, 6 }
 0x382   : > { %v1843_v29 = vsel %vm1841_vm13, %v1838_v14, %v1738_v8  ;;  %v1844_v16 = vsel %vm1841_vm13, %v1839_v15, %v1742_v56  ;;  %v1478_v57 = vrot.slane %v3112_v51, 7 }
 0x383   : > { %v1840_v17 = vsel %vm1836_vm12, %v1835_v31, %v1726_v13  ;;  %v1290_v31 = vrot.slane %v1286_v20, %v3115_v55  ;;  %vm1382_vm4 = vcmp.ne.s32.totalorder %v1381_v9, 0 }
 0x384   : > { %v1845_v59 = vsel %vm1841_vm13, %v1840_v17, %v1746_v53  ;;  %v1383_v11 = vsel %vm1382_vm4, 1, %v2522_v21  ;;  %vm1479_vm5 = vcmp.ne.s32.totalorder %v1478_v57, 0 }
 0x385   : > { %vm1291_vm2 = vcmp.eq.s32.totalorder %v1290_v31, 1  ;;  %v1387_v63 = vrot.slane %v1383_v11, %v3115_v55  ;;  %v1480_v53 = vsel %vm1479_vm5, 1, %v2522_v21 }
 0x386   : > { %v1484_v15 = vrot.slane %v1480_v53, %v3115_v55 }
 0x387   : > { %vm1388_vm6 = vcmp.eq.s32.totalorder %v1387_v63, 1 }
 0x388   : > { %vm1485_vm7 = vcmp.eq.s32.totalorder %v1484_v15, 1 }
 0x395   : > { %v1181_v24 = vpop.f32.mrb[12].mxu0 }
 0x396   : > { %v1182_v25 = vadd.f32 %v1181_v24, %v3120_v36  ;;  %v2242_v49 = vpop.f32.mrb[13].mxu0 }
 0x397   : > { %v1184_v27 = vpop.f32.mrb[14].mxu0 }
 0x398   : > { %v1195_v28 = vsel %vm1194_vm0, %v1182_v25, -9e+15  ;;  %v2243_v45 = vpop.f32.mrb[15].mxu0 }
 0x399   : > { %v1598_v34 = vrot.slane %v1195_v28, %v3124_v47 }
 0x39b   : > { %v1599_v22 = vcombine.high %v1598_v34, %v1598_v34  ;;  %v1606_v35 = vrot.slane %v1598_v34, %v3124_v47 }
 0x39d   : > { %v1613_v37 = vrot.slane %v1599_v22, %v3124_v47  ;;  %v1614_v38 = vcombine.high %v1606_v35, %v1606_v35  ;;  %v1754_v4 = vrot.slane %v1606_v35, %v3115_v55 }
 0x39f   : > { %v1615_v39 = vcombine.high %v1613_v37, %v1613_v37  ;;  %v1758_v33 = vrot.slane %v1613_v37, %v3115_v55  ;;  %v1762_v40 = vrot.slane %v1614_v38, %v3115_v55  ;;  %v1847_v32 = vsel %vm1846_vm1, %v1842_v6, %v1754_v4  ;;  %v1278_v3 = vpop.f32.mrb[24].mxu1 }
 0x3a0   : > { %v1279_v42 = vadd.f32 %v1278_v3, %v3120_v36  ;;  %v2262_v43 = vpop.f32.mrb[25].mxu1 }
 0x3a1   : > { %v1766_v44 = vrot.slane %v1615_v39, %v3115_v55  ;;  %v1848_v12 = vsel %vm1846_vm1, %v1843_v29, %v1758_v33  ;;  %v1849_v46 = vsel %vm1846_vm1, %v1844_v16, %v1762_v40  ;;  %v1281_v48 = vpop.f32.mrb[26].mxu1 }
 0x3a2   : > { %v1292_v1 = vsel %vm1291_vm2, %v1279_v42, -9e+15  ;;  %v2263_v41 = vpop.f32.mrb[27].mxu1 }
 0x3a3   : > { %v1850_v50 = vsel %vm1846_vm1, %v1845_v59, %v1766_v44  ;;  %v1623_v10 = vrot.slane %v1292_v1, %v3124_v47 }
 0x3a5   : > { %v1624_v54 = vcombine.high %v1623_v10, %v1623_v10  ;;  %v1631_v30 = vrot.slane %v1623_v10, %v3124_v47 }
 0x3a7   : > { %v1638_v18 = vrot.slane %v1624_v54, %v3124_v47  ;;  %v1639_v52 = vcombine.high %v1631_v30, %v1631_v30  ;;  %v1774_v58 = vrot.slane %v1631_v30, %v3115_v55 }
 0x3a9   : > { %v1640_v60 = vcombine.high %v1638_v18, %v1638_v18  ;;  %v1778_v62 = vrot.slane %v1638_v18, %v3115_v55  ;;  %v1782_v61 = vrot.slane %v1639_v52, %v3115_v55  ;;  %v1852_v0 = vsel %vm1851_vm3, %v1847_v32, %v1774_v58 }
 0x3ab   : > { %v1786_v2 = vrot.slane %v1640_v60, %v3115_v55  ;;  %v1853_v7 = vsel %vm1851_vm3, %v1848_v12, %v1778_v62  ;;  %v1854_v8 = vsel %vm1851_vm3, %v1849_v46, %v1782_v61 }
 0x3ad   : > { %v1855_v56 = vsel %vm1851_vm3, %v1850_v50, %v1786_v2 }
 0x3bf   : > { %v1375_v6 = vpop.f32.mrb[16].mxu0 }
 0x3c0   : > { %v1376_v13 = vadd.f32 %v1375_v6, %v3120_v36  ;;  %v2282_v14 = vpop.f32.mrb[17].mxu0 }
 0x3c1   : > { %v1378_v29 = vpop.f32.mrb[18].mxu0 }
 0x3c2   : > { %v1389_v16 = vsel %vm1388_vm6, %v1376_v13, -9e+15  ;;  %v2283_v17 = vpop.f32.mrb[19].mxu0 }
 0x3c3   : > { %v1648_v51 = vrot.slane %v1389_v16, %v3124_v47 }
 0x3c4   : > { %v1472_v59 = vpop.f32.mrb[28].mxu1 }
 0x3c5   : > { %v1649_v26 = vcombine.high %v1648_v51, %v1648_v51  ;;  %v1656_v5 = vrot.slane %v1648_v51, %v3124_v47  ;;  %v1473_v21 = vadd.f32 %v1472_v59, %v3120_v36  ;;  %v2302_v19 = vpop.f32.mrb[29].mxu1 }
 0x3c6   : > { %v1475_v23 = vpop.f32.mrb[30].mxu1 }
 0x3c7   : > { %v1663_v24 = vrot.slane %v1649_v26, %v3124_v47  ;;  %v1664_v25 = vcombine.high %v1656_v5, %v1656_v5  ;;  %v1794_v49 = vrot.slane %v1656_v5, %v3115_v55  ;;  %v1486_v20 = vsel %vm1485_vm7, %v1473_v21, -9e+15  ;;  %v2303_v27 = vpop.f32.mrb[31].mxu1 }
 0x3c8   : > { %v1673_v28 = vrot.slane %v1486_v20, %v3124_v47 }
 0x3c9   : > { %v1665_v45 = vcombine.high %v1663_v24, %v1663_v24  ;;  %v1798_v34 = vrot.slane %v1663_v24, %v3115_v55  ;;  %v1802_v31 = vrot.slane %v1664_v25, %v3115_v55  ;;  %v1857_v36 = vsel %vm1856_vm8, %v1852_v0, %v1794_v49 }
 0x3ca   : > { %v1674_v22 = vcombine.high %v1673_v28, %v1673_v28  ;;  %v1681_v35 = vrot.slane %v1673_v28, %v3124_v47 }
 0x3cb   : > { %v1806_v37 = vrot.slane %v1665_v45, %v3115_v55  ;;  %v1858_v38 = vsel %vm1856_vm8, %v1853_v7, %v1798_v34  ;;  %v1859_v4 = vsel %vm1856_vm8, %v1854_v8, %v1802_v31 }
 0x3cc   : > { %v1688_v39 = vrot.slane %v1674_v22, %v3124_v47  ;;  %v1689_v33 = vcombine.high %v1681_v35, %v1681_v35  ;;  %v1814_v40 = vrot.slane %v1681_v35, %v3115_v55 }
 0x3cd   : > { %v1860_v32 = vsel %vm1856_vm8, %v1855_v56, %v1806_v37 }
 0x3ce   : > { %v1690_v3 = vcombine.high %v1688_v39, %v1688_v39  ;;  %v1818_v42 = vrot.slane %v1688_v39, %v3115_v55  ;;  %v1822_v43 = vrot.slane %v1689_v33, %v3115_v55  ;;  %v1862_v44 = vsel %vm1861_vm9, %v1857_v36, %v1814_v40 }
 0x3cf   : > { %1867 = vst.msk [vmem:[%s369_s22] sm:$0xff] %vm1866_vm10, %v1862_v44 }
 0x3d0   : > { %v1826_v47 = vrot.slane %v1690_v3, %v3115_v55  ;;  %v1863_v12 = vsel %vm1861_vm9, %v1858_v38, %v1818_v42  ;;  %v1864_v46 = vsel %vm1861_vm9, %v1859_v4, %v1822_v43 }
 0x3d1   : > { %1868 = vst.msk [vmem:[%s369_s22 + $0x8] sm:$0xff] %vm1866_vm10, %v1863_v12  ;;  %1869 = vst.msk [vmem:[%s369_s22 + $0x10] sm:$0xff] %vm1866_vm10, %v1864_v46 }
 0x3d2   : > { %v1865_v55 = vsel %vm1861_vm9, %v1860_v32, %v1826_v47 }
 0x3d3   : > { %1870 = vst.msk [vmem:[%s369_s22 + $0x18] sm:$0xff] %vm1866_vm10, %v1865_v55 }
 0x3d4   : > { %2452 = shalt.err (!%p2449_p5)
}
 0x3d5   : > { %s2453_s19 = scalar_lea.hbm %s3230_s25, 512  ;;  %s2457_s22 = scalar_lea.hbm %s3294_s8, 1024 }
 0x3d6   : > { %p2454_p6 = scmp.ne.s32.totalorder %s3230_s25, %s2453_s19  ;;  %p2458_p10 = scmp.lt.u32.totalorder %s3230_s25, %s3294_s8 }
 0x3d7   : > { %p2459_p11 = scmp.lt.u32.totalorder %s2457_s22, %s2453_s19  ;;  %p2461_p13 = scmp.lt.u32.totalorder %s2453_s19, %s3230_s25 }
 0x3d8   : > { %p2455_p7 = pnand %p2454_p6, %p2618_p4 }
 0x3d9   : > { %p2460_p12 = por %p2459_p11, %p2458_p10 }
 0x3da   : > { %p2456_p9 = pneg %p2455_p7 }
 0x3db   : > { %p2462_p0 = por %p2461_p13, %p2460_p12 }
 0x3dd   : > { %p2463_p1 = pnand %p2462_p0, %p2456_p9 }
 0x3df   : > { %2466 = shalt.err (!%p2463_p1)
}
 0x3e0   : > { %s2531_s11 = smov 128   ;;  %s2532_s12 = smov 8  }
 0x3e1   : > { %2305 = dma.vmem_to_hbm [thread:$0]  (%p2618_p4), %s3232_s23, 512, %s3230_s25, %s3240_s26, %s2531_s11, %s2531_s11, %s2532_s12  }
 0x3e2 PF: > { %p2311_p2 = scmp.ge.s32.totalorder %s2517_s10, 2  ;;  %s1902_s14 = sand.u32 1, %s2497_s27  }
 0x3e3   : > { %s1903_s16 = scalar_lea.sflag [#allocation4], %s1902_s14 }
 0x3e4   : > { %p2308_p3 = pnand %p2311_p2, %p2625_p8 }
 0x3e6   : > { %2492 = dma.done.wait (!%p2308_p3), %s1903_s16, 512  }
 0x3e7   : > { %2494 = vsyncadd (!%p2308_p3), %s1903_s16, 4294966784  ;;  %s21_s10 = sadd.s32 1, %s2517_s10   ;;  %s3297_s27 = smov %s2501_s28 }
 0x3e8   : > { %p18_p5 = scmp.ge.s32.totalorder %s21_s10, 4   ;;  %s3298_s28 = smov %s2505_s29 }
 0x3e9   : > { %s3299_s29 = smov %s2631_s18  ;;  %s3300_s30 = smov %s2513_s9 }
 0x3ea   : > { %s3301_s9 = smov %s3303_s13  ;;  %20 = sbr.rel (!%p18_p5) target bundleno = 4 (0x4), region = 93 }
 0x3f1   :  { %1908 = vsyncpa [#allocation4], 1 }
 0x3f2   :  { %1910 = vsyncpa [#allocation4 + $0x1], 1 }

</bundles_post_ra>
